<compile_context>
chip_gen: v5e
topology: v5e:2x2
jax: 0.10.0
libtpu: 0.0.40
codegen_flags: <defaults>
</compile_context>

<pallas_src>
import numpy as np

import jax
import jax.numpy as jnp
from jax.experimental import pallas as pl
from jax.experimental.pallas import tpu as pltpu

EPS = 1e-12                               # GraphNet.eps for float32 dtype
BN_EPS = 1e-5                             # nn.BatchNorm1d default eps
BN_SCALE = 1.0 / (1.0 + BN_EPS) ** 0.5    # (x - 0) / sqrt(1 + eps) * 1 + 0


def _adjust_var_list(data, num):
    if not isinstance(data, (list, tuple)):
        return [data] * num
    data = list(data)
    if len(data) < num:
        data = data + [data[-1]] * (num - len(data))
    return data[:num]


def _round_up(x, m):
    return ((x + m - 1) // m) * m


def _choose_tb(batch, num_nodes, packed_width):
    """Graphs per grid step.

    Targets ~2048 packed rows (TB*N) per step to amortise per-step pipeline
    overhead, caps the (TB*N, packed_width) f32 intermediates so they fit
    v5e's scoped-VMEM budget comfortably, and rebalances to >= 4 grid steps
    for large batches so both of v7x's TensorCores get work.
    """
    tb = max(1, 2048 // max(1, num_nodes))
    vmem_cap = max(1, (12 << 20) // max(1, 8 * num_nodes * packed_width * 4))
    tb = max(1, min(tb, vmem_cap, 1024))
    if batch <= tb:
        return batch                       # single grid step, no padding
    steps = -(-batch // tb)
    if steps < 4 and (-(-batch // 4)) * num_nodes >= 1024:
        steps = 4                          # v7x: >=4 balanced steps, 2 TCs
    return -(-batch // steps)              # balanced tile -> minimal padding


# ----------------------- parameter packing (BN fold + one slab) ---------------

def pack_params(params, cfg, metric="cartesian"):
    """Fold eval-mode BatchNorm into the linear weights, build the lane-packed
    weight forms (neighbour-tiled / block-diagonal / row-tiled) and pack every
    matrix into one (8,128)-aligned f32 slab plus a static layout plan."""
    N = cfg["num_nodes"]
    blocks = []
    row = 0
    max_w = 1

    def add(mat):
        nonlocal row, max_w
        mat = np.asarray(mat, np.float32)
        if mat.ndim == 1:
            mat = mat.reshape(1, -1)
        off = row
        blocks.append((off, mat))
        row = _round_up(row + mat.shape[0], 8)
        max_w = max(max_w, mat.shape[1])
        return off

    def fold(layer):
        w, b, sc, sh = (np.asarray(t, np.float64) for t in layer)
        b, sc, sh = b.reshape(1, -1), sc.reshape(1, -1), sh.reshape(1, -1)
        if float(np.max(np.abs(sh))) != 0.0:
            # TODO(synk): nonzero BN shift (running_mean != 0 / bias != 0) must
            # be folded into the *next* layer; eval-default running stats give
            # shift == 0, which is all this kernel supports.
            raise NotImplementedError("nonzero BN shift not supported")
        assert np.all(sc > 0.0), "BN scale must be > 0 to fold through leaky_relu"
        # BN(leaky(xW + b)) = sc*leaky(xW + b) = leaky(x(W*sc) + b*sc)  (sc > 0)
        return (w * sc).astype(np.float32), (b * sc).astype(np.float32)

    plan = []
    for step_params in params:
        e_layers = step_params["edge"]
        n_layers = step_params["node"]

        w0, b0 = fold(e_layers[0])
        fi0, E = w0.shape
        H = (fi0 - 1) // 2
        assert fi0 == 2 * H + 1
        mink = (str(metric).lower() == "minkowskian" and H == 4)

        # distance segment-reduction matrix (N*H, N):
        #   cartesian  : sum of each H-lane block          -> sqrt in kernel
        #   minkowskian: 2*dsq[f=0] - 2*sum_f dsq[f] folded into the matrix
        red = np.zeros((N * H, N), np.float32)
        for k in range(N):
            if mink:
                red[k * H:(k + 1) * H, k] = -2.0
                red[k * H, k] = 0.0
            else:
                red[k * H:(k + 1) * H, k] = 1.0
        red_off = add(red)

        # edge layer 0, lane-packed: contribution of [x1 | d] via W0c and of
        # x2 via kron(I_N, w_x2); bias tiled over the N neighbour segments.
        w_x1, w_x2, w_d = w0[:H], w0[H:2 * H], w0[2 * H]
        W0c = np.zeros((H + N, N * E), np.float32)
        Wx2k = np.zeros((N * H, N * E), np.float32)
        for k in range(N):
            W0c[:H, k * E:(k + 1) * E] = w_x1
            W0c[H + k, k * E:(k + 1) * E] = w_d
            Wx2k[k * H:(k + 1) * H, k * E:(k + 1) * E] = w_x2
        e0 = (add(W0c), add(Wx2k), add(np.tile(b0, (1, N))), N * E)

        # edge layers >= 1: block-diagonal over the N neighbour segments
        e_rest = []
        for layer in e_layers[1:]:
            w, b = fold(layer)
            fo = w.shape[1]
            Wbd = np.zeros((N * E, N * fo), np.float32)
            for k in range(N):
                Wbd[k * E:(k + 1) * E, k * fo:(k + 1) * fo] = w
            e_rest.append((add(Wbd), N * E, add(np.tile(b, (1, N))), N * fo))
            E = fo

        # node layer 0: neighbour aggregation folded in (w_a row-tiled N times)
        w, b = fold(n_layers[0])
        assert w.shape[0] == E + H
        n0 = w.shape[1]
        n0_plan = (add(np.tile(w[:E], (N, 1))), N * E, add(w[E:]), add(b), n0)

        # remaining node layers: plain
        n_rest = []
        for layer in n_layers[1:]:
            w, b = fold(layer)
            n_rest.append((add(w), w.shape[0], add(b), w.shape[1]))

        plan.append(dict(H=H, mink=mink, red=red_off, e0=e0,
                         e_rest=e_rest, n0=n0_plan, n_rest=n_rest))

    cols = _round_up(max_w, 128)
    rows = _round_up(max(row, 8), 8)
    slab = np.zeros((rows, cols), np.float32)
    for off, mat in blocks:
        slab[off:off + mat.shape[0], :mat.shape[1]] = mat
    return jnp.asarray(slab), plan, cols


# ----------------------- fused kernel ------------------------------------------

def _make_graphnet_kernel(plan, num_mps, num_nodes, alphas, tb, out_size):
    N = num_nodes
    TB = tb

    def leaky(v, alpha):
        return jnp.where(v >= 0, v, alpha * v)

    def kernel(x_ref, slab_ref, out_ref):
        def W(off, rows, cols):
            return slab_ref[off:off + rows, 0:cols]

        h2 = x_ref[...].reshape(TB * N, plan[0]["H"])          # (TB*N, H0)

        for step in range(num_mps):
            p = plan[step]
            alpha = alphas[step]
            H = p["H"]
            NH = N * H

            # ---- pack neighbour features into lanes -----------------------
            # h_bg[(t,a), k*H+f] = h[t,k,f]  (per-graph broadcast over a)
            # h_t [(t,a), k*H+f] = h[t,a,f]  (own features tiled over k)
            h3 = h2.reshape(TB, N, H)
            h_bg = jnp.concatenate(
                [jnp.broadcast_to(h3[:, k:k + 1, :], (TB, N, H))
                     .reshape(TB * N, H) for k in range(N)], axis=1)
            h_t = jnp.concatenate([h2] * N, axis=1)

            # ---- pairwise distances, lane-dense ----------------------------
            # diff = x2 - x1 + eps, exactly as the reference (eps inside diff)
            diff = (h_bg - h_t) + EPS
            dsq = diff * diff
            d2 = jnp.dot(dsq, W(p["red"], NH, N),
                         preferred_element_type=jnp.float32)    # (TB*N, N)
            if not p["mink"]:
                d2 = jnp.sqrt(d2)

            # ---- edge layer 0: concat([x1, x2, d]) @ W without the concat --
            oW0, oX2, oB0, w0 = p["e0"]
            x0 = jnp.concatenate([h2, d2], axis=1)              # (TB*N, H+N)
            a = (jnp.dot(x0, W(oW0, H + N, w0),
                         preferred_element_type=jnp.float32)
                 + jnp.dot(h_bg, W(oX2, NH, w0),
                           preferred_element_type=jnp.float32)
                 + W(oB0, 1, w0))
            a = leaky(a, alpha)                                 # (TB*N, N*E0)

            # ---- edge layers >= 1: block-diagonal over neighbour segments --
            for (oWb, iw, oBb, ow) in p["e_rest"]:
                a = leaky(jnp.dot(a, W(oWb, iw, ow),
                                  preferred_element_type=jnp.float32)
                          + W(oBb, 1, ow), alpha)
            # TODO(synk): nn.Dropout is stochastic in train mode; eval == identity.

            # ---- node layer 0: neighbour sum folded into row-tiled matmul --
            oWa, aw, oWx, oBn, n0 = p["n0"]
            hn = (jnp.dot(a, W(oWa, aw, n0),
                          preferred_element_type=jnp.float32)
                  + jnp.dot(h2, W(oWx, H, n0),
                            preferred_element_type=jnp.float32)
                  + W(oBn, 1, n0))
            hn = leaky(hn, alpha)

            # ---- remaining node layers -------------------------------------
            for (oWn, fi, oBnr, fo) in p["n_rest"]:
                hn = leaky(jnp.dot(hn, W(oWn, fi, fo),
                                   preferred_element_type=jnp.float32)
                           + W(oBnr, 1, fo), alpha)

            h2 = hn                                             # (TB*N, next H)

        # TODO(synk): output_node_size (<128) means masked vst on writeback;
        # the output is tiny relative to the edge work, so the lane-dense
        # output relayout was intentionally not applied.
        out_ref[...] = h2.reshape(TB, N, out_size)

    return kernel


def graphnet_forward(x, params, cfg, metric="cartesian"):
    N = cfg["num_nodes"]
    H0 = cfg["node_sizes"][0][0]
    out_size = cfg["output_node_size"]
    B = x.shape[0]

    # F.pad on the feature dimension (done once, outside the kernel).
    x = x.astype(jnp.float32)
    x = jnp.pad(x, ((0, 0), (0, 0), (0, H0 - cfg["input_node_size"])))

    slab, plan, packed_width = pack_params(params, cfg, metric)
    TB = _choose_tb(B, N, packed_width)
    grid = -(-B // TB)
    B_pad = grid * TB
    if B_pad != B:
        # pad the batch so every grid step processes a full TB graphs
        x = jnp.pad(x, ((0, B_pad - B), (0, 0), (0, 0)))

    kernel = _make_graphnet_kernel(plan, cfg["num_mps"], N, cfg["alphas"],
                                   TB, out_size)

    out = pl.pallas_call(
        kernel,
        out_shape=jax.ShapeDtypeStruct((B_pad, N, out_size), jnp.float32),
        grid_spec=pltpu.PrefetchScalarGridSpec(
            num_scalar_prefetch=0,
            grid=(grid,),
            in_specs=[
                pl.BlockSpec((TB, N, H0), lambda b: (b, 0, 0)),
                pl.BlockSpec(slab.shape, lambda b: (0, 0)),
            ],
            out_specs=pl.BlockSpec((TB, N, out_size), lambda b: (b, 0, 0)),
        ),
        compiler_params=pltpu.CompilerParams(
            dimension_semantics=("parallel",),
            vmem_limit_bytes=32 * 1024 * 1024),
    )(x, slab)
    return out[:B]


# ----------------------- parameter initialization -----------------------------

def _init_linear(key, fan_in, fan_out):
    kw, kb = jax.random.split(key)
    bound = 1.0 / (fan_in ** 0.5)
    w = jax.random.uniform(kw, (fan_in, fan_out), jnp.float32, -bound, bound)
    b = jax.random.uniform(kb, (1, fan_out), jnp.float32, -bound, bound)
    sc = jnp.full((1, fan_out), BN_SCALE, jnp.float32)   # BN weight=1, var=1
    sh = jnp.zeros((1, fan_out), jnp.float32)            # BN bias=0, mean=0
    return (w, b, sc, sh)


def init_params(key, cfg):
    node_sizes, edge_sizes = cfg["node_sizes"], cfg["edge_sizes"]
    num_mps = cfg["num_mps"]
    params = []
    for i in range(num_mps):
        # edge net: Linear(2*node0+1 -> e0 -> e1 -> ...)
        edge_dims = [2 * node_sizes[i][0] + 1] + list(edge_sizes[i])
        edge_layers = []
        for j in range(len(edge_sizes[i])):
            key, sub = jax.random.split(key)
            edge_layers.append(_init_linear(sub, edge_dims[j], edge_dims[j + 1]))
        # node net: Linear(e_last+n0 -> n0), Linear(n_j -> n_{j+1}),
        #           Linear(n_last -> next_n0 or output_node_size)
        ns = node_sizes[i]
        next_size = (node_sizes[i + 1][0] if i + 1 < num_mps
                     else cfg["output_node_size"])
        node_shapes = [(edge_sizes[i][-1] + ns[0], ns[0])]
        node_shapes += [(ns[j], ns[j + 1]) for j in range(len(ns) - 1)]
        node_shapes += [(ns[-1], next_size)]
        node_layers = []
        for fi, fo in node_shapes:
            key, sub = jax.random.split(key)
            node_layers.append(_init_linear(sub, fi, fo))
        params.append({"edge": edge_layers, "node": node_layers})
    return params


# ----------------------- pure-JAX reference (for checking) --------------------

def graphnet_ref(x, params, cfg, metric="cartesian"):
    node_sizes = cfg["node_sizes"]
    x = jnp.pad(x, ((0, 0), (0, 0),
                    (0, node_sizes[0][0] - cfg["input_node_size"])))
    B, N, _ = x.shape
    for i in range(cfg["num_mps"]):
        H = x.shape[-1]
        alpha = cfg["alphas"][i]
        x1 = jnp.broadcast_to(x[:, :, None, :], (B, N, N, H)).reshape(B, N * N, H)
        x2 = jnp.broadcast_to(x[:, None, :, :], (B, N, N, H)).reshape(B, N * N, H)
        diff = x2 - x1 + EPS
        if H == 4 and metric == "minkowskian":
            d = (2.0 * diff[..., 0:1] ** 2
                 - 2.0 * jnp.sum(diff ** 2, axis=-1, keepdims=True))
        else:
            d = jnp.sqrt(jnp.sum(diff ** 2, axis=-1, keepdims=True))
        a = jnp.concatenate([x1, x2, d], axis=-1)
        for (w, b, sc, sh) in params[i]["edge"]:
            a = a @ w + b
            a = jnp.where(a >= 0, a, alpha * a)
            a = a * sc + sh
        E = a.shape[-1]
        a = jnp.sum(a.reshape(B, N, N, E), axis=2)
        h = jnp.concatenate([a, x], axis=-1)
        for (w, b, sc, sh) in params[i]["node"]:
            h = h @ w + b
            h = jnp.where(h >= 0, h, alpha * h)
            h = h * sc + sh
        x = h
    return x


if __name__ == "__main__":
    num_mps = 2
    cfg = dict(
        num_nodes=8,
        input_node_size=3,
        output_node_size=4,
        node_sizes=_adjust_var_list([[16, 16]], num_mps),
        edge_sizes=_adjust_var_list([[16, 16]], num_mps),
        num_mps=num_mps,
        alphas=_adjust_var_list(0.1, num_mps),
    )

    key = jax.random.PRNGKey(0)
    kp, kx = jax.random.split(key)
    params = init_params(kp, cfg)
    x = jax.random.normal(kx, (2, cfg["num_nodes"], cfg["input_node_size"]),
                          jnp.float32)

    out = graphnet_forward(x, params, cfg)
    out = jax.block_until_ready(out)

    ref = graphnet_ref(x, params, cfg)
    assert out.shape == (2, cfg["num_nodes"], cfg["output_node_size"]), out.shape
    err = float(jnp.max(jnp.abs(out - ref)))
    assert err < 1e-4, f"kernel/reference mismatch: {err}"
    print("KERNEL_OK")
</pallas_src>

<mosaic_0001>
module attributes {stable_mosaic.version = 11 : i64} {
  func.func @kernel(%arg0: i32, %arg1: memref<2x8x16xf32, #tpu.memory_space<vmem>>, %arg2: memref<1248x128xf32, #tpu.memory_space<vmem>>, %arg3: memref<2x8x4xf32, #tpu.memory_space<vmem>>) attributes {dimension_semantics = [#tpu.dimension_semantics<parallel>], iteration_bounds = array<i64: 1>, scalar_prefetch = 0 : i64, scratch_operands = 0 : i64, tpu.core_type = #tpu.core_type<tc>, window_params = [{transform_indices = @transform_0, window_bounds = array<i64: 2, 8, 16>}, {pipeline_mode = #tpu.pipeline_mode<synchronous>, transform_indices = @transform_1, window_bounds = array<i64: 1248, 128>}, {transform_indices = @transform_2, window_bounds = array<i64: 2, 8, 4>}]} {
    %c0 = arith.constant 0 : index
    %c0_0 = arith.constant 0 : index
    %c0_1 = arith.constant 0 : index
    %0 = vector.load %arg1[%c0, %c0_0, %c0_1] : memref<2x8x16xf32, #tpu.memory_space<vmem>>, vector<2x8x16xf32>
    %1 = vector.shape_cast %0 : vector<2x8x16xf32> to vector<16x16xf32>
    %2 = vector.shape_cast %1 : vector<16x16xf32> to vector<2x8x16xf32>
    %3 = vector.extract_strided_slice %2 {offsets = [0, 0, 0], sizes = [2, 1, 16], strides = [1, 1, 1]} : vector<2x8x16xf32> to vector<2x1x16xf32>
    %4 = vector.shape_cast %3 : vector<2x1x16xf32> to vector<2x1x16xf32>
    %5 = vector.broadcast %4 : vector<2x1x16xf32> to vector<2x8x16xf32>
    %6 = vector.shape_cast %5 : vector<2x8x16xf32> to vector<16x16xf32>
    %7 = vector.extract_strided_slice %2 {offsets = [0, 1, 0], sizes = [2, 1, 16], strides = [1, 1, 1]} : vector<2x8x16xf32> to vector<2x1x16xf32>
    %8 = vector.shape_cast %7 : vector<2x1x16xf32> to vector<2x1x16xf32>
    %9 = vector.broadcast %8 : vector<2x1x16xf32> to vector<2x8x16xf32>
    %10 = vector.shape_cast %9 : vector<2x8x16xf32> to vector<16x16xf32>
    %11 = vector.extract_strided_slice %2 {offsets = [0, 2, 0], sizes = [2, 1, 16], strides = [1, 1, 1]} : vector<2x8x16xf32> to vector<2x1x16xf32>
    %12 = vector.shape_cast %11 : vector<2x1x16xf32> to vector<2x1x16xf32>
    %13 = vector.broadcast %12 : vector<2x1x16xf32> to vector<2x8x16xf32>
    %14 = vector.shape_cast %13 : vector<2x8x16xf32> to vector<16x16xf32>
    %15 = vector.extract_strided_slice %2 {offsets = [0, 3, 0], sizes = [2, 1, 16], strides = [1, 1, 1]} : vector<2x8x16xf32> to vector<2x1x16xf32>
    %16 = vector.shape_cast %15 : vector<2x1x16xf32> to vector<2x1x16xf32>
    %17 = vector.broadcast %16 : vector<2x1x16xf32> to vector<2x8x16xf32>
    %18 = vector.shape_cast %17 : vector<2x8x16xf32> to vector<16x16xf32>
    %19 = vector.extract_strided_slice %2 {offsets = [0, 4, 0], sizes = [2, 1, 16], strides = [1, 1, 1]} : vector<2x8x16xf32> to vector<2x1x16xf32>
    %20 = vector.shape_cast %19 : vector<2x1x16xf32> to vector<2x1x16xf32>
    %21 = vector.broadcast %20 : vector<2x1x16xf32> to vector<2x8x16xf32>
    %22 = vector.shape_cast %21 : vector<2x8x16xf32> to vector<16x16xf32>
    %23 = vector.extract_strided_slice %2 {offsets = [0, 5, 0], sizes = [2, 1, 16], strides = [1, 1, 1]} : vector<2x8x16xf32> to vector<2x1x16xf32>
    %24 = vector.shape_cast %23 : vector<2x1x16xf32> to vector<2x1x16xf32>
    %25 = vector.broadcast %24 : vector<2x1x16xf32> to vector<2x8x16xf32>
    %26 = vector.shape_cast %25 : vector<2x8x16xf32> to vector<16x16xf32>
    %27 = vector.extract_strided_slice %2 {offsets = [0, 6, 0], sizes = [2, 1, 16], strides = [1, 1, 1]} : vector<2x8x16xf32> to vector<2x1x16xf32>
    %28 = vector.shape_cast %27 : vector<2x1x16xf32> to vector<2x1x16xf32>
    %29 = vector.broadcast %28 : vector<2x1x16xf32> to vector<2x8x16xf32>
    %30 = vector.shape_cast %29 : vector<2x8x16xf32> to vector<16x16xf32>
    %31 = vector.extract_strided_slice %2 {offsets = [0, 7, 0], sizes = [2, 1, 16], strides = [1, 1, 1]} : vector<2x8x16xf32> to vector<2x1x16xf32>
    %32 = vector.shape_cast %31 : vector<2x1x16xf32> to vector<2x1x16xf32>
    %33 = vector.broadcast %32 : vector<2x1x16xf32> to vector<2x8x16xf32>
    %34 = vector.shape_cast %33 : vector<2x8x16xf32> to vector<16x16xf32>
    %35 = tpu.concatenate %6, %10, %14, %18, %22, %26, %30, %34 in 1 : vector<16x16xf32>, vector<16x16xf32>, vector<16x16xf32>, vector<16x16xf32>, vector<16x16xf32>, vector<16x16xf32>, vector<16x16xf32>, vector<16x16xf32> -> vector<16x128xf32>
    %36 = tpu.concatenate %1, %1, %1, %1, %1, %1, %1, %1 in 1 : vector<16x16xf32>, vector<16x16xf32>, vector<16x16xf32>, vector<16x16xf32>, vector<16x16xf32>, vector<16x16xf32>, vector<16x16xf32>, vector<16x16xf32> -> vector<16x128xf32>
    %37 = arith.subf %35, %36 : vector<16x128xf32>
    %cst = arith.constant 9.99999996E-13 : f32
    %38 = vector.broadcast %cst : f32 to vector<16x128xf32>
    %39 = arith.addf %37, %38 : vector<16x128xf32>
    %40 = arith.mulf %39, %39 : vector<16x128xf32>
    %c0_2 = arith.constant 0 : index
    %c0_3 = arith.constant 0 : index
    %41 = vector.load %arg2[%c0_2, %c0_3] : memref<1248x128xf32, #tpu.memory_space<vmem>>, vector<128x8xf32>
    %cst_4 = arith.constant dense<0.000000e+00> : vector<16x8xf32>
    %42 = tpu.matmul %40, %41, %cst_4 {dimension_numbers = #tpu.dot_dimension_numbers<[1], [0], [0], [1], [0, 0, 1, 1], [], []>} : vector<16x128xf32>, vector<128x8xf32>, vector<16x8xf32> -> vector<16x8xf32>
    %43 = math.sqrt %42 : vector<16x8xf32>
    %44 = tpu.concatenate %1, %43 in 1 : vector<16x16xf32>, vector<16x8xf32> -> vector<16x24xf32>
    %c128 = arith.constant 128 : index
    %c0_5 = arith.constant 0 : index
    %45 = vector.load %arg2[%c128, %c0_5] : memref<1248x128xf32, #tpu.memory_space<vmem>>, vector<24x128xf32>
    %cst_6 = arith.constant dense<0.000000e+00> : vector<16x128xf32>
    %46 = tpu.matmul %44, %45, %cst_6 {dimension_numbers = #tpu.dot_dimension_numbers<[1], [0], [0], [1], [0, 0, 1, 1], [], []>} : vector<16x24xf32>, vector<24x128xf32>, vector<16x128xf32> -> vector<16x128xf32>
    %c152 = arith.constant 152 : index
    %c0_7 = arith.constant 0 : index
    %47 = vector.load %arg2[%c152, %c0_7] : memref<1248x128xf32, #tpu.memory_space<vmem>>, vector<128x128xf32>
    %cst_8 = arith.constant dense<0.000000e+00> : vector<16x128xf32>
    %48 = tpu.matmul %35, %47, %cst_8 {dimension_numbers = #tpu.dot_dimension_numbers<[1], [0], [0], [1], [0, 0, 1, 1], [], []>} : vector<16x128xf32>, vector<128x128xf32>, vector<16x128xf32> -> vector<16x128xf32>
    %49 = arith.addf %46, %48 : vector<16x128xf32>
    %c280 = arith.constant 280 : index
    %c0_9 = arith.constant 0 : index
    %50 = vector.load %arg2[%c280, %c0_9] : memref<1248x128xf32, #tpu.memory_space<vmem>>, vector<1x128xf32>
    %51 = vector.broadcast %50 : vector<1x128xf32> to vector<16x128xf32>
    %52 = arith.addf %49, %51 : vector<16x128xf32>
    %cst_10 = arith.constant 0.000000e+00 : f32
    %53 = vector.broadcast %cst_10 : f32 to vector<16x128xf32>
    %54 = arith.cmpf oge, %52, %53 : vector<16x128xf32>
    %cst_11 = arith.constant 1.000000e-01 : f32
    %55 = vector.broadcast %cst_11 : f32 to vector<16x128xf32>
    %56 = arith.mulf %55, %52 : vector<16x128xf32>
    %57 = arith.select %54, %52, %56 : vector<16x128xi1>, vector<16x128xf32>
    %c288 = arith.constant 288 : index
    %c0_12 = arith.constant 0 : index
    %58 = vector.load %arg2[%c288, %c0_12] : memref<1248x128xf32, #tpu.memory_space<vmem>>, vector<128x128xf32>
    %cst_13 = arith.constant dense<0.000000e+00> : vector<16x128xf32>
    %59 = tpu.matmul %57, %58, %cst_13 {dimension_numbers = #tpu.dot_dimension_numbers<[1], [0], [0], [1], [0, 0, 1, 1], [], []>} : vector<16x128xf32>, vector<128x128xf32>, vector<16x128xf32> -> vector<16x128xf32>
    %c416 = arith.constant 416 : index
    %c0_14 = arith.constant 0 : index
    %60 = vector.load %arg2[%c416, %c0_14] : memref<1248x128xf32, #tpu.memory_space<vmem>>, vector<1x128xf32>
    %61 = vector.broadcast %60 : vector<1x128xf32> to vector<16x128xf32>
    %62 = arith.addf %59, %61 : vector<16x128xf32>
    %cst_15 = arith.constant 0.000000e+00 : f32
    %63 = vector.broadcast %cst_15 : f32 to vector<16x128xf32>
    %64 = arith.cmpf oge, %62, %63 : vector<16x128xf32>
    %cst_16 = arith.constant 1.000000e-01 : f32
    %65 = vector.broadcast %cst_16 : f32 to vector<16x128xf32>
    %66 = arith.mulf %65, %62 : vector<16x128xf32>
    %67 = arith.select %64, %62, %66 : vector<16x128xi1>, vector<16x128xf32>
    %c424 = arith.constant 424 : index
    %c0_17 = arith.constant 0 : index
    %68 = vector.load %arg2[%c424, %c0_17] : memref<1248x128xf32, #tpu.memory_space<vmem>>, vector<128x16xf32>
    %cst_18 = arith.constant dense<0.000000e+00> : vector<16x16xf32>
    %69 = tpu.matmul %67, %68, %cst_18 {dimension_numbers = #tpu.dot_dimension_numbers<[1], [0], [0], [1], [0, 0, 1, 1], [], []>} : vector<16x128xf32>, vector<128x16xf32>, vector<16x16xf32> -> vector<16x16xf32>
    %c552 = arith.constant 552 : index
    %c0_19 = arith.constant 0 : index
    %70 = vector.load %arg2[%c552, %c0_19] : memref<1248x128xf32, #tpu.memory_space<vmem>>, vector<16x16xf32>
    %cst_20 = arith.constant dense<0.000000e+00> : vector<16x16xf32>
    %71 = tpu.matmul %1, %70, %cst_20 {dimension_numbers = #tpu.dot_dimension_numbers<[1], [0], [0], [1], [0, 0, 1, 1], [], []>} : vector<16x16xf32>, vector<16x16xf32>, vector<16x16xf32> -> vector<16x16xf32>
    %72 = arith.addf %69, %71 : vector<16x16xf32>
    %c568 = arith.constant 568 : index
    %c0_21 = arith.constant 0 : index
    %73 = vector.load %arg2[%c568, %c0_21] : memref<1248x128xf32, #tpu.memory_space<vmem>>, vector<1x16xf32>
    %74 = vector.broadcast %73 : vector<1x16xf32> to vector<16x16xf32>
    %75 = arith.addf %72, %74 : vector<16x16xf32>
    %cst_22 = arith.constant 0.000000e+00 : f32
    %76 = vector.broadcast %cst_22 : f32 to vector<16x16xf32>
    %77 = arith.cmpf oge, %75, %76 : vector<16x16xf32>
    %cst_23 = arith.constant 1.000000e-01 : f32
    %78 = vector.broadcast %cst_23 : f32 to vector<16x16xf32>
    %79 = arith.mulf %78, %75 : vector<16x16xf32>
    %80 = arith.select %77, %75, %79 : vector<16x16xi1>, vector<16x16xf32>
    %c576 = arith.constant 576 : index
    %c0_24 = arith.constant 0 : index
    %81 = vector.load %arg2[%c576, %c0_24] : memref<1248x128xf32, #tpu.memory_space<vmem>>, vector<16x16xf32>
    %cst_25 = arith.constant dense<0.000000e+00> : vector<16x16xf32>
    %82 = tpu.matmul %80, %81, %cst_25 {dimension_numbers = #tpu.dot_dimension_numbers<[1], [0], [0], [1], [0, 0, 1, 1], [], []>} : vector<16x16xf32>, vector<16x16xf32>, vector<16x16xf32> -> vector<16x16xf32>
    %c592 = arith.constant 592 : index
    %c0_26 = arith.constant 0 : index
    %83 = vector.load %arg2[%c592, %c0_26] : memref<1248x128xf32, #tpu.memory_space<vmem>>, vector<1x16xf32>
    %84 = vector.broadcast %83 : vector<1x16xf32> to vector<16x16xf32>
    %85 = arith.addf %82, %84 : vector<16x16xf32>
    %cst_27 = arith.constant 0.000000e+00 : f32
    %86 = vector.broadcast %cst_27 : f32 to vector<16x16xf32>
    %87 = arith.cmpf oge, %85, %86 : vector<16x16xf32>
    %cst_28 = arith.constant 1.000000e-01 : f32
    %88 = vector.broadcast %cst_28 : f32 to vector<16x16xf32>
    %89 = arith.mulf %88, %85 : vector<16x16xf32>
    %90 = arith.select %87, %85, %89 : vector<16x16xi1>, vector<16x16xf32>
    %c600 = arith.constant 600 : index
    %c0_29 = arith.constant 0 : index
    %91 = vector.load %arg2[%c600, %c0_29] : memref<1248x128xf32, #tpu.memory_space<vmem>>, vector<16x16xf32>
    %cst_30 = arith.constant dense<0.000000e+00> : vector<16x16xf32>
    %92 = tpu.matmul %90, %91, %cst_30 {dimension_numbers = #tpu.dot_dimension_numbers<[1], [0], [0], [1], [0, 0, 1, 1], [], []>} : vector<16x16xf32>, vector<16x16xf32>, vector<16x16xf32> -> vector<16x16xf32>
    %c616 = arith.constant 616 : index
    %c0_31 = arith.constant 0 : index
    %93 = vector.load %arg2[%c616, %c0_31] : memref<1248x128xf32, #tpu.memory_space<vmem>>, vector<1x16xf32>
    %94 = vector.broadcast %93 : vector<1x16xf32> to vector<16x16xf32>
    %95 = arith.addf %92, %94 : vector<16x16xf32>
    %cst_32 = arith.constant 0.000000e+00 : f32
    %96 = vector.broadcast %cst_32 : f32 to vector<16x16xf32>
    %97 = arith.cmpf oge, %95, %96 : vector<16x16xf32>
    %cst_33 = arith.constant 1.000000e-01 : f32
    %98 = vector.broadcast %cst_33 : f32 to vector<16x16xf32>
    %99 = arith.mulf %98, %95 : vector<16x16xf32>
    %100 = arith.select %97, %95, %99 : vector<16x16xi1>, vector<16x16xf32>
    %101 = vector.shape_cast %100 : vector<16x16xf32> to vector<2x8x16xf32>
    %102 = vector.extract_strided_slice %101 {offsets = [0, 0, 0], sizes = [2, 1, 16], strides = [1, 1, 1]} : vector<2x8x16xf32> to vector<2x1x16xf32>
    %103 = vector.shape_cast %102 : vector<2x1x16xf32> to vector<2x1x16xf32>
    %104 = vector.broadcast %103 : vector<2x1x16xf32> to vector<2x8x16xf32>
    %105 = vector.shape_cast %104 : vector<2x8x16xf32> to vector<16x16xf32>
    %106 = vector.extract_strided_slice %101 {offsets = [0, 1, 0], sizes = [2, 1, 16], strides = [1, 1, 1]} : vector<2x8x16xf32> to vector<2x1x16xf32>
    %107 = vector.shape_cast %106 : vector<2x1x16xf32> to vector<2x1x16xf32>
    %108 = vector.broadcast %107 : vector<2x1x16xf32> to vector<2x8x16xf32>
    %109 = vector.shape_cast %108 : vector<2x8x16xf32> to vector<16x16xf32>
    %110 = vector.extract_strided_slice %101 {offsets = [0, 2, 0], sizes = [2, 1, 16], strides = [1, 1, 1]} : vector<2x8x16xf32> to vector<2x1x16xf32>
    %111 = vector.shape_cast %110 : vector<2x1x16xf32> to vector<2x1x16xf32>
    %112 = vector.broadcast %111 : vector<2x1x16xf32> to vector<2x8x16xf32>
    %113 = vector.shape_cast %112 : vector<2x8x16xf32> to vector<16x16xf32>
    %114 = vector.extract_strided_slice %101 {offsets = [0, 3, 0], sizes = [2, 1, 16], strides = [1, 1, 1]} : vector<2x8x16xf32> to vector<2x1x16xf32>
    %115 = vector.shape_cast %114 : vector<2x1x16xf32> to vector<2x1x16xf32>
    %116 = vector.broadcast %115 : vector<2x1x16xf32> to vector<2x8x16xf32>
    %117 = vector.shape_cast %116 : vector<2x8x16xf32> to vector<16x16xf32>
    %118 = vector.extract_strided_slice %101 {offsets = [0, 4, 0], sizes = [2, 1, 16], strides = [1, 1, 1]} : vector<2x8x16xf32> to vector<2x1x16xf32>
    %119 = vector.shape_cast %118 : vector<2x1x16xf32> to vector<2x1x16xf32>
    %120 = vector.broadcast %119 : vector<2x1x16xf32> to vector<2x8x16xf32>
    %121 = vector.shape_cast %120 : vector<2x8x16xf32> to vector<16x16xf32>
    %122 = vector.extract_strided_slice %101 {offsets = [0, 5, 0], sizes = [2, 1, 16], strides = [1, 1, 1]} : vector<2x8x16xf32> to vector<2x1x16xf32>
    %123 = vector.shape_cast %122 : vector<2x1x16xf32> to vector<2x1x16xf32>
    %124 = vector.broadcast %123 : vector<2x1x16xf32> to vector<2x8x16xf32>
    %125 = vector.shape_cast %124 : vector<2x8x16xf32> to vector<16x16xf32>
    %126 = vector.extract_strided_slice %101 {offsets = [0, 6, 0], sizes = [2, 1, 16], strides = [1, 1, 1]} : vector<2x8x16xf32> to vector<2x1x16xf32>
    %127 = vector.shape_cast %126 : vector<2x1x16xf32> to vector<2x1x16xf32>
    %128 = vector.broadcast %127 : vector<2x1x16xf32> to vector<2x8x16xf32>
    %129 = vector.shape_cast %128 : vector<2x8x16xf32> to vector<16x16xf32>
    %130 = vector.extract_strided_slice %101 {offsets = [0, 7, 0], sizes = [2, 1, 16], strides = [1, 1, 1]} : vector<2x8x16xf32> to vector<2x1x16xf32>
    %131 = vector.shape_cast %130 : vector<2x1x16xf32> to vector<2x1x16xf32>
    %132 = vector.broadcast %131 : vector<2x1x16xf32> to vector<2x8x16xf32>
    %133 = vector.shape_cast %132 : vector<2x8x16xf32> to vector<16x16xf32>
    %134 = tpu.concatenate %105, %109, %113, %117, %121, %125, %129, %133 in 1 : vector<16x16xf32>, vector<16x16xf32>, vector<16x16xf32>, vector<16x16xf32>, vector<16x16xf32>, vector<16x16xf32>, vector<16x16xf32>, vector<16x16xf32> -> vector<16x128xf32>
    %135 = tpu.concatenate %100, %100, %100, %100, %100, %100, %100, %100 in 1 : vector<16x16xf32>, vector<16x16xf32>, vector<16x16xf32>, vector<16x16xf32>, vector<16x16xf32>, vector<16x16xf32>, vector<16x16xf32>, vector<16x16xf32> -> vector<16x128xf32>
    %136 = arith.subf %134, %135 : vector<16x128xf32>
    %cst_34 = arith.constant 9.99999996E-13 : f32
    %137 = vector.broadcast %cst_34 : f32 to vector<16x128xf32>
    %138 = arith.addf %136, %137 : vector<16x128xf32>
    %139 = arith.mulf %138, %138 : vector<16x128xf32>
    %c624 = arith.constant 624 : index
    %c0_35 = arith.constant 0 : index
    %140 = vector.load %arg2[%c624, %c0_35] : memref<1248x128xf32, #tpu.memory_space<vmem>>, vector<128x8xf32>
    %cst_36 = arith.constant dense<0.000000e+00> : vector<16x8xf32>
    %141 = tpu.matmul %139, %140, %cst_36 {dimension_numbers = #tpu.dot_dimension_numbers<[1], [0], [0], [1], [0, 0, 1, 1], [], []>} : vector<16x128xf32>, vector<128x8xf32>, vector<16x8xf32> -> vector<16x8xf32>
    %142 = math.sqrt %141 : vector<16x8xf32>
    %143 = tpu.concatenate %100, %142 in 1 : vector<16x16xf32>, vector<16x8xf32> -> vector<16x24xf32>
    %c752 = arith.constant 752 : index
    %c0_37 = arith.constant 0 : index
    %144 = vector.load %arg2[%c752, %c0_37] : memref<1248x128xf32, #tpu.memory_space<vmem>>, vector<24x128xf32>
    %cst_38 = arith.constant dense<0.000000e+00> : vector<16x128xf32>
    %145 = tpu.matmul %143, %144, %cst_38 {dimension_numbers = #tpu.dot_dimension_numbers<[1], [0], [0], [1], [0, 0, 1, 1], [], []>} : vector<16x24xf32>, vector<24x128xf32>, vector<16x128xf32> -> vector<16x128xf32>
    %c776 = arith.constant 776 : index
    %c0_39 = arith.constant 0 : index
    %146 = vector.load %arg2[%c776, %c0_39] : memref<1248x128xf32, #tpu.memory_space<vmem>>, vector<128x128xf32>
    %cst_40 = arith.constant dense<0.000000e+00> : vector<16x128xf32>
    %147 = tpu.matmul %134, %146, %cst_40 {dimension_numbers = #tpu.dot_dimension_numbers<[1], [0], [0], [1], [0, 0, 1, 1], [], []>} : vector<16x128xf32>, vector<128x128xf32>, vector<16x128xf32> -> vector<16x128xf32>
    %148 = arith.addf %145, %147 : vector<16x128xf32>
    %c904 = arith.constant 904 : index
    %c0_41 = arith.constant 0 : index
    %149 = vector.load %arg2[%c904, %c0_41] : memref<1248x128xf32, #tpu.memory_space<vmem>>, vector<1x128xf32>
    %150 = vector.broadcast %149 : vector<1x128xf32> to vector<16x128xf32>
    %151 = arith.addf %148, %150 : vector<16x128xf32>
    %cst_42 = arith.constant 0.000000e+00 : f32
    %152 = vector.broadcast %cst_42 : f32 to vector<16x128xf32>
    %153 = arith.cmpf oge, %151, %152 : vector<16x128xf32>
    %cst_43 = arith.constant 1.000000e-01 : f32
    %154 = vector.broadcast %cst_43 : f32 to vector<16x128xf32>
    %155 = arith.mulf %154, %151 : vector<16x128xf32>
    %156 = arith.select %153, %151, %155 : vector<16x128xi1>, vector<16x128xf32>
    %c912 = arith.constant 912 : index
    %c0_44 = arith.constant 0 : index
    %157 = vector.load %arg2[%c912, %c0_44] : memref<1248x128xf32, #tpu.memory_space<vmem>>, vector<128x128xf32>
    %cst_45 = arith.constant dense<0.000000e+00> : vector<16x128xf32>
    %158 = tpu.matmul %156, %157, %cst_45 {dimension_numbers = #tpu.dot_dimension_numbers<[1], [0], [0], [1], [0, 0, 1, 1], [], []>} : vector<16x128xf32>, vector<128x128xf32>, vector<16x128xf32> -> vector<16x128xf32>
    %c1040 = arith.constant 1040 : index
    %c0_46 = arith.constant 0 : index
    %159 = vector.load %arg2[%c1040, %c0_46] : memref<1248x128xf32, #tpu.memory_space<vmem>>, vector<1x128xf32>
    %160 = vector.broadcast %159 : vector<1x128xf32> to vector<16x128xf32>
    %161 = arith.addf %158, %160 : vector<16x128xf32>
    %cst_47 = arith.constant 0.000000e+00 : f32
    %162 = vector.broadcast %cst_47 : f32 to vector<16x128xf32>
    %163 = arith.cmpf oge, %161, %162 : vector<16x128xf32>
    %cst_48 = arith.constant 1.000000e-01 : f32
    %164 = vector.broadcast %cst_48 : f32 to vector<16x128xf32>
    %165 = arith.mulf %164, %161 : vector<16x128xf32>
    %166 = arith.select %163, %161, %165 : vector<16x128xi1>, vector<16x128xf32>
    %c1048 = arith.constant 1048 : index
    %c0_49 = arith.constant 0 : index
    %167 = vector.load %arg2[%c1048, %c0_49] : memref<1248x128xf32, #tpu.memory_space<vmem>>, vector<128x16xf32>
    %cst_50 = arith.constant dense<0.000000e+00> : vector<16x16xf32>
    %168 = tpu.matmul %166, %167, %cst_50 {dimension_numbers = #tpu.dot_dimension_numbers<[1], [0], [0], [1], [0, 0, 1, 1], [], []>} : vector<16x128xf32>, vector<128x16xf32>, vector<16x16xf32> -> vector<16x16xf32>
    %c1176 = arith.constant 1176 : index
    %c0_51 = arith.constant 0 : index
    %169 = vector.load %arg2[%c1176, %c0_51] : memref<1248x128xf32, #tpu.memory_space<vmem>>, vector<16x16xf32>
    %cst_52 = arith.constant dense<0.000000e+00> : vector<16x16xf32>
    %170 = tpu.matmul %100, %169, %cst_52 {dimension_numbers = #tpu.dot_dimension_numbers<[1], [0], [0], [1], [0, 0, 1, 1], [], []>} : vector<16x16xf32>, vector<16x16xf32>, vector<16x16xf32> -> vector<16x16xf32>
    %171 = arith.addf %168, %170 : vector<16x16xf32>
    %c1192 = arith.constant 1192 : index
    %c0_53 = arith.constant 0 : index
    %172 = vector.load %arg2[%c1192, %c0_53] : memref<1248x128xf32, #tpu.memory_space<vmem>>, vector<1x16xf32>
    %173 = vector.broadcast %172 : vector<1x16xf32> to vector<16x16xf32>
    %174 = arith.addf %171, %173 : vector<16x16xf32>
    %cst_54 = arith.constant 0.000000e+00 : f32
    %175 = vector.broadcast %cst_54 : f32 to vector<16x16xf32>
    %176 = arith.cmpf oge, %174, %175 : vector<16x16xf32>
    %cst_55 = arith.constant 1.000000e-01 : f32
    %177 = vector.broadcast %cst_55 : f32 to vector<16x16xf32>
    %178 = arith.mulf %177, %174 : vector<16x16xf32>
    %179 = arith.select %176, %174, %178 : vector<16x16xi1>, vector<16x16xf32>
    %c1200 = arith.constant 1200 : index
    %c0_56 = arith.constant 0 : index
    %180 = vector.load %arg2[%c1200, %c0_56] : memref<1248x128xf32, #tpu.memory_space<vmem>>, vector<16x16xf32>
    %cst_57 = arith.constant dense<0.000000e+00> : vector<16x16xf32>
    %181 = tpu.matmul %179, %180, %cst_57 {dimension_numbers = #tpu.dot_dimension_numbers<[1], [0], [0], [1], [0, 0, 1, 1], [], []>} : vector<16x16xf32>, vector<16x16xf32>, vector<16x16xf32> -> vector<16x16xf32>
    %c1216 = arith.constant 1216 : index
    %c0_58 = arith.constant 0 : index
    %182 = vector.load %arg2[%c1216, %c0_58] : memref<1248x128xf32, #tpu.memory_space<vmem>>, vector<1x16xf32>
    %183 = vector.broadcast %182 : vector<1x16xf32> to vector<16x16xf32>
    %184 = arith.addf %181, %183 : vector<16x16xf32>
    %cst_59 = arith.constant 0.000000e+00 : f32
    %185 = vector.broadcast %cst_59 : f32 to vector<16x16xf32>
    %186 = arith.cmpf oge, %184, %185 : vector<16x16xf32>
    %cst_60 = arith.constant 1.000000e-01 : f32
    %187 = vector.broadcast %cst_60 : f32 to vector<16x16xf32>
    %188 = arith.mulf %187, %184 : vector<16x16xf32>
    %189 = arith.select %186, %184, %188 : vector<16x16xi1>, vector<16x16xf32>
    %c1224 = arith.constant 1224 : index
    %c0_61 = arith.constant 0 : index
    %190 = vector.load %arg2[%c1224, %c0_61] : memref<1248x128xf32, #tpu.memory_space<vmem>>, vector<16x4xf32>
    %cst_62 = arith.constant dense<0.000000e+00> : vector<16x4xf32>
    %191 = tpu.matmul %189, %190, %cst_62 {dimension_numbers = #tpu.dot_dimension_numbers<[1], [0], [0], [1], [0, 0, 1, 1], [], []>} : vector<16x16xf32>, vector<16x4xf32>, vector<16x4xf32> -> vector<16x4xf32>
    %c1240 = arith.constant 1240 : index
    %c0_63 = arith.constant 0 : index
    %192 = vector.load %arg2[%c1240, %c0_63] : memref<1248x128xf32, #tpu.memory_space<vmem>>, vector<1x4xf32>
    %193 = vector.broadcast %192 : vector<1x4xf32> to vector<16x4xf32>
    %194 = arith.addf %191, %193 : vector<16x4xf32>
    %cst_64 = arith.constant 0.000000e+00 : f32
    %195 = vector.broadcast %cst_64 : f32 to vector<16x4xf32>
    %196 = arith.cmpf oge, %194, %195 : vector<16x4xf32>
    %cst_65 = arith.constant 1.000000e-01 : f32
    %197 = vector.broadcast %cst_65 : f32 to vector<16x4xf32>
    %198 = arith.mulf %197, %194 : vector<16x4xf32>
    %199 = arith.select %196, %194, %198 : vector<16x4xi1>, vector<16x4xf32>
    %200 = vector.shape_cast %199 : vector<16x4xf32> to vector<2x8x4xf32>
    %c0_66 = arith.constant 0 : index
    %c0_67 = arith.constant 0 : index
    %c0_68 = arith.constant 0 : index
    %201 = vector.load %arg3[%c0_66, %c0_67, %c0_68] : memref<2x8x4xf32, #tpu.memory_space<vmem>>, vector<2x8x4xf32>
    tpu.vector_store %arg3[%c0_66, %c0_67, %c0_68], %200 {strides = array<i32>} : memref<2x8x4xf32, #tpu.memory_space<vmem>>, vector<2x8x4xf32>,
    return
  }
  func.func @transform_0(%arg0: i32) -> (i32, i32, i32) {
    %c0_i32 = arith.constant 0 : i32
    %c0_i32_0 = arith.constant 0 : i32
    %c0_i32_1 = arith.constant 0 : i32
    return %arg0, %c0_i32, %c0_i32_0 : i32, i32, i32
  }
  func.func @transform_1(%arg0: i32) -> (i32, i32) {
    %c0_i32 = arith.constant 0 : i32
    %c0_i32_0 = arith.constant 0 : i32
    %c0_i32_1 = arith.constant 0 : i32
    return %c0_i32, %c0_i32_0 : i32, i32
  }
  func.func @transform_2(%arg0: i32) -> (i32, i32, i32) {
    %c0_i32 = arith.constant 0 : i32
    %c0_i32_0 = arith.constant 0 : i32
    %c0_i32_1 = arith.constant 0 : i32
    return %arg0, %c0_i32, %c0_i32_0 : i32, i32, i32
  }
}

</mosaic_0001>

<bundles_post_ra>
// kernel: tpu_custom_call.1
= control target key start
LH: loop header
LB: loop body
LE: loop exit
PB: predicated region body
PF: predicated region fallthrough
CT: control target
= control target key end

     0   :  { %7 = vsyncpa [#allocation3], 0  ;;  %s1435_s0 = inlined_call_operand.hbm [shape: f32[2,8,16], index: 0, kind: input, shape index: {}]   ;;  %s1436_s1 = inlined_call_operand.hbm [shape: f32[1248,128], index: 1, kind: input, shape index: {}]   ;;  %s1437_s2 = inlined_call_operand.vmem [shape: f32[2,8,4], index: 2, kind: output, shape index: {}]  }
   0x1   :  { %s13_s11 = sshll.u32 %s1435_s0, 4  ;;  %s14_s11 = int_to_ptr.hbm [resolvable:$true] %s13_s11 }
   0x2   :  { %8 = vsyncpa [#allocation5], 0  ;;  %s1175_s12 = smov [#allocation2]   ;;  %s26_s16 = sshll.u32 %s1436_s1, 4  ;;  %s27_s16 = int_to_ptr.hbm [resolvable:$true] %s26_s16 }
   0x3   :  { %s15_s13 = sshll.u32 %s1175_s12, 4  ;;  %s1176_s17 = smov 128   ;;  %s16_s13 = int_to_ptr.vmem [resolvable:$true] %s15_s13 }
   0x4   :  { %s1177_s18 = smov 8   ;;  %s1178_s19 = smov [#allocation4]  }
   0x5   :  { %21 = dma.hbm_to_vmem [thread:$0]  %s14_s11, 256, %s16_s13, [#allocation3], %s1176_s17, %s1176_s17, %s1177_s18  }
   0x6   :  { %s28_s20 = sshll.u32 %s1178_s19, 4  ;;  %s29_s20 = int_to_ptr.vmem [resolvable:$true] %s28_s20 }
   0x7   :  { %34 = dma.hbm_to_vmem [thread:$0]  %s27_s16, 19968, %s29_s20, [#allocation5], %s1176_s17, %s1176_s17, %s1177_s18  }
   0x8   :  { %1171 = dma.done.wait [#allocation3], 256  }
   0x9   :  { %1172 = vsyncadd [#allocation3], 4294967040 }
   0xa   :  { %1173 = dma.done.wait [#allocation5], 19968  }
   0xb   :  { %1174 = vsyncadd [#allocation5], 4294947328  ;;  %v1207_v0 = vld [vmem:[#allocation2] sm:$0xff]  ;;  %s1179_s0 = smov 32   ;;  %s1180_s21 = smov 16   ;;  %v1234_v8 = vld [vmem:[#allocation2 + $0x8] sm:$0xff] }
   0xc   :  { %146 = vrot.lane.b32.xlu1 %v1207_v0, %s1179_s0  ;;  %140 = vrot.lane.b32.xlu0 %v1207_v0, %s1180_s21  ;;  %s1181_s1 = smov 48   ;;  %v49_v1 = vperm.slane %v1207_v0, 2  ;;  %v47_v2 = vperm.slane %v1207_v0, 1  ;;  %v51_v3 = vperm.slane %v1207_v0, 3  ;;  %v53_v4 = vperm.slane %v1207_v0, 4  ;;  %s1182_s22 = smov 64  }
   0xd   :  { %152 = vrot.lane.b32.xlu2 %v1207_v0, %s1181_s1  ;;  %v55_v5 = vperm.slane %v1207_v0, 5  ;;  %s1183_s23 = smov 80   ;;  %v57_v6 = vperm.slane %v1207_v0, 6  ;;  %s1184_s24 = smov 96   ;;  %v59_v7 = vperm.slane %v1207_v0, 7  ;;  %v48_v9 = vperm.slane %v1234_v8, 1 }
   0xe   :  { %s1185_s25 = smov 112   ;;  %v50_v10 = vperm.slane %v1234_v8, 2  ;;  %v52_v11 = vperm.slane %v1234_v8, 3  ;;  %v54_v12 = vperm.slane %v1234_v8, 4  ;;  %v56_v13 = vperm.slane %v1234_v8, 5  ;;  %v293_v16 = vld [vmem:[#allocation4 + $0x110] sm:$0xff] }
   0xf   :  { %v58_v14 = vperm.slane %v1234_v8, 6  ;;  %v60_v15 = vperm.slane %v1234_v8, 7  ;;  %294 = vmatpush.msra.mxu1 %v293_v16  ;;  %v292_v17 = vld [vmem:[#allocation4 + $0x108] sm:$0xff]  ;;  %v291_v18 = vld [vmem:[#allocation4 + $0x100] sm:$0xff]  ;;  %v217_v19 = vld [vmem:[#allocation4 + $0x78] sm:$0xff]  ;;  %v45_v58 = vperm.slane %v1207_v0, 0 }
  0x10   :  { %v290_v20 = vld [vmem:[#allocation4 + $0xf8] sm:$0xff]  ;;  %218 = vmatpush.msra.mxu0 %v217_v19  ;;  %v216_v21 = vld [vmem:[#allocation4 + $0x70] sm:$0xff]  ;;  %v215_v23 = vld [vmem:[#allocation4 + $0x68] sm:$0xff]  ;;  %vm117_vm0 = vcmask 130048   ;;  %vm120_vm1 = vcmask 261120   ;;  %vm123_vm2 = vcmask 392192  }
  0x11   :  { %295 = vmatpush.msra.mxu1 %v292_v17  ;;  %v289_v22 = vld [vmem:[#allocation4 + $0xf0] sm:$0xff]  ;;  %v288_v24 = vld [vmem:[#allocation4 + $0xe8] sm:$0xff]  ;;  %v214_v25 = vld [vmem:[#allocation4 + $0x60] sm:$0xff]  ;;  %vm126_vm3 = vcmask 523264   ;;  %vm129_vm4 = vcmask 654336   ;;  %vm132_vm5 = vcmask 785408  }
  0x12   :  { %219 = vmatpush.msra.mxu0 %v216_v21  ;;  %v287_v26 = vld [vmem:[#allocation4 + $0xe0] sm:$0xff]  ;;  %v213_v27 = vld [vmem:[#allocation4 + $0x58] sm:$0xff]  ;;  %v212_v30 = vld [vmem:[#allocation4 + $0x50] sm:$0xff]  ;;  %vm135_vm6 = vcmask 916480   ;;  %vm317_vm11 = vcmask 195584  }
  0x13   :  { %296 = vmatpush.msra.mxu1 %v291_v18  ;;  %v286_v28 = vld [vmem:[#allocation4 + $0xd8] sm:$0xff]  ;;  %v285_v31 = vld [vmem:[#allocation4 + $0xd0] sm:$0xff]  ;;  %v211_v32 = vld [vmem:[#allocation4 + $0x48] sm:$0xff] }
  0x14   :  { %71 = vrot.lane.b32.xlu1 %v49_v1, %s1179_s0  ;;  %63 = vrot.lane.b32.xlu0 %v47_v2, %s1180_s21  ;;  %v284_v33 = vld [vmem:[#allocation4 + $0xc8] sm:$0xff]  ;;  %v210_v34 = vld [vmem:[#allocation4 + $0x40] sm:$0xff]  ;;  %v209_v36 = vld [vmem:[#allocation4 + $0x38] sm:$0xff] }
  0x15   :  { %79 = vrot.lane.b32.xlu2 %v51_v3, %s1181_s1  ;;  %297 = vmatpush.msra.mxu1 %v290_v20  ;;  %v283_v35 = vld [vmem:[#allocation4 + $0xc0] sm:$0xff]  ;;  %v282_v37 = vld [vmem:[#allocation4 + $0xb8] sm:$0xff]  ;;  %v208_v38 = vld [vmem:[#allocation4 + $0x30] sm:$0xff] }
  0x16   :  { %220 = vmatpush.msra.mxu0 %v215_v23  ;;  %v281_v39 = vld [vmem:[#allocation4 + $0xb0] sm:$0xff]  ;;  %v207_v40 = vld [vmem:[#allocation4 + $0x28] sm:$0xff]  ;;  %v206_v43 = vld [vmem:[#allocation4 + $0x20] sm:$0xff]  ;;  %v46_v23 = vperm.slane %v1234_v8, 0 }
  0x17   :  { %298 = vmatpush.msra.mxu1 %v289_v22  ;;  %v280_v42 = vld [vmem:[#allocation4 + $0xa8] sm:$0xff]  ;;  %v279_v44 = vld [vmem:[#allocation4 + $0xa0] sm:$0xff]  ;;  %v205_v47 = vld [vmem:[#allocation4 + $0x18] sm:$0xff] }
  0x18   :  { %221 = vmatpush.msra.mxu0 %v214_v25  ;;  %v278_v48 = vld [vmem:[#allocation4 + $0x98] sm:$0xff]  ;;  %v204_v49 = vld [vmem:[#allocation4 + $0x10] sm:$0xff]  ;;  %v203_v50 = vld [vmem:[#allocation4 + $0x8] sm:$0xff] }
  0x19   :  { %299 = vmatpush.msra.mxu1 %v288_v24  ;;  %v202_v51 = vld [vmem:[#allocation4] sm:$0xff] }
  0x1a   :  { %222 = vmatpush.msra.mxu0 %v213_v27 }
  0x1b   :  { %300 = vmatpush.msra.mxu1 %v287_v26 }
  0x1c   :  { %158 = vrot.lane.b32.xlu1 %v1207_v0, %s1182_s22  ;;  %87 = vrot.lane.b32.xlu0 %v53_v4, %s1182_s22 }
  0x1d   :  { %95 = vrot.lane.b32.xlu2 %v55_v5, %s1183_s23  ;;  %301 = vmatpush.msra.mxu1 %v286_v28 }
  0x1e   :  { %223 = vmatpush.msra.mxu0 %v212_v30 }
  0x1f   :  { %302 = vmatpush.msra.mxu1 %v285_v31 }
  0x20   :  { %224 = vmatpush.msra.mxu0 %v211_v32 }
  0x21   :  { %303 = vmatpush.msra.mxu1 %v284_v33 }
  0x22   :  { %225 = vmatpush.msra.mxu0 %v210_v34 }
  0x23   :  { %304 = vmatpush.msra.mxu1 %v283_v35 }
  0x24   :  { %103 = vrot.lane.b32.xlu1 %v57_v6, %s1184_s24  ;;  %164 = vrot.lane.b32.xlu0 %v1207_v0, %s1183_s23 }
  0x25   :  { %170 = vrot.lane.b32.xlu2 %v1207_v0, %s1184_s24  ;;  %226 = vmatpush.msra.mxu0 %v209_v36 }
  0x26   :  { %305 = vmatpush.msra.mxu1 %v282_v37 }
  0x27   :  { %227 = vmatpush.msra.mxu0 %v208_v38 }
  0x28   :  { %306 = vmatpush.msra.mxu1 %v281_v39 }
  0x29   :  { %228 = vmatpush.msra.mxu0 %v207_v40 }
  0x2a   :  { %307 = vmatpush.msra.mxu1 %v280_v42 }
  0x2b   :  { %229 = vmatpush.msra.mxu0 %v206_v43 }
  0x2c   :  { %176 = vrot.lane.b32.xlu1 %v1207_v0, %s1185_s25  ;;  %111 = vrot.lane.b32.xlu0 %v59_v7, %s1185_s25 }
  0x2d   :  { %65 = vrot.lane.b32.xlu2 %v48_v9, %s1180_s21  ;;  %308 = vmatpush.msra.mxu1 %v279_v44 }
  0x2e   :  { %230 = vmatpush.msra.mxu0 %v205_v47 }
  0x2f   :  { %309 = vmatpush.msra.mxu1 %v278_v48 }
  0x30   :  { %231 = vmatpush.msra.mxu0 %v204_v49 }
  0x32   :  { %232 = vmatpush.msra.mxu0 %v203_v50 }
  0x34   :  { %142 = vrot.lane.b32.xlu0 %v1234_v8, %s1180_s21  ;;  %73 = vrot.lane.b32.xlu1 %v50_v10, %s1179_s0 }
  0x35   :  { %148 = vrot.lane.b32.xlu2 %v1234_v8, %s1179_s0  ;;  %233 = vmatpush.msra.mxu0 %v202_v51 }
  0x3c   :  { %81 = vrot.lane.b32.xlu0 %v52_v11, %s1181_s1  ;;  %154 = vrot.lane.b32.xlu1 %v1234_v8, %s1181_s1 }
  0x3d   :  { %89 = vrot.lane.b32.xlu2 %v54_v12, %s1182_s22 }
  0x44   :  { %160 = vrot.lane.b32.xlu0 %v1234_v8, %s1182_s22  ;;  %97 = vrot.lane.b32.xlu1 %v56_v13, %s1183_s23 }
  0x45   :  { %166 = vrot.lane.b32.xlu2 %v1234_v8, %s1183_s23 }
  0x4c   :  { %105 = vrot.lane.b32.xlu0 %v58_v14, %s1184_s24  ;;  %172 = vrot.lane.b32.xlu1 %v1234_v8, %s1184_s24 }
  0x4d   :  { %113 = vrot.lane.b32.xlu2 %v60_v15, %s1185_s25 }
  0x54   :  { %178 = vrot.lane.b32.xlu0 %v1234_v8, %s1185_s25 }
  0x67   :  { %v1267_v29 = vpop.permute.xlu2 %152 }
  0x6f   :  { %v80_v41 = vpop.permute.xlu2 %79 }
  0x77   :  { %v96_v52 = vpop.permute.xlu2 %95 }
  0x7e   :  { %v147_v45 = vpop.permute.xlu1 %146  ;;  %v141_v46 = vpop.permute.xlu0 %140 }
  0x7f   :  { %v171_v55 = vpop.permute.xlu2 %170  ;;  %v182_v59 = vsel %vm117_vm0, %v1207_v0, %v141_v46 }
  0x80   :  { %v184_v62 = vsel %vm120_vm1, %v182_v59, %v147_v45 }
  0x81   :  { %v186_v3 = vsel %vm123_vm2, %v184_v62, %v1267_v29  ;;  %v276_v62 = vld [vmem:[#allocation4 + $0x88] sm:$0xff] }
  0x86   :  { %v72_v53 = vpop.permute.xlu1 %71  ;;  %v64_v54 = vpop.permute.xlu0 %63 }
  0x87   :  { %v118_v60 = vsel %vm117_vm0, %v45_v58, %v64_v54  ;;  %v66_v61 = vpop.permute.xlu2 %65 }
  0x88   :  { %v121_v63 = vsel %vm120_vm1, %v118_v60, %v72_v53  ;;  %v119_v26 = vsel %vm117_vm0, %v46_v23, %v66_v61  ;;  %v277_v61 = vld [vmem:[#allocation4 + $0x90] sm:$0xff] }
  0x89   :  { %v124_v4 = vsel %vm123_vm2, %v121_v63, %v80_v41  ;;  %337 = vmatpush.msra.mxu2 %v277_v61  ;;  %v404_v61 = vld [vmem:[#allocation4 + $0x1a8] sm:$0xff] }
  0x8b   :  { %338 = vmatpush.msra.mxu2 %v276_v62  ;;  %v483_v62 = vld [vmem:[#allocation4 + $0x248] sm:$0xff] }
  0x8c   :  { %506 = vmatpush.msrb.mxu0 %v483_v62  ;;  %v797_v62 = vld [vmem:[#allocation4 + $0x360] sm:$0xff] }
  0x8e   :  { %v159_v56 = vpop.permute.xlu1 %158  ;;  %v88_v57 = vpop.permute.xlu0 %87 }
  0x8f   :  { %v188_v5 = vsel %vm126_vm3, %v186_v3, %v159_v56  ;;  %v127_v6 = vsel %vm126_vm3, %v124_v4, %v88_v57  ;;  %v149_v16 = vpop.permute.xlu2 %148 }
  0x90   :  { %v130_v9 = vsel %vm129_vm4, %v127_v6, %v96_v52 }
  0x96   :  { %v104_v1 = vpop.permute.xlu1 %103  ;;  %v165_v2 = vpop.permute.xlu0 %164 }
  0x97   :  { %v190_v7 = vsel %vm129_vm4, %v188_v5, %v165_v2  ;;  %v133_v10 = vsel %vm132_vm5, %v130_v9, %v104_v1  ;;  %v90_v22 = vpop.permute.xlu2 %89 }
  0x98   :  { %v192_v11 = vsel %vm132_vm5, %v190_v7, %v171_v55 }
  0x9e   :  { %v177_v12 = vpop.permute.xlu1 %176  ;;  %v112_v13 = vpop.permute.xlu0 %111 }
  0x9f   :  { %v194_v14 = vsel %vm135_vm6, %v192_v11, %v177_v12  ;;  %v136_v15 = vsel %vm135_vm6, %v133_v10, %v112_v13  ;;  %v167_v28 = vpop.permute.xlu2 %166  ;;  %v275_v12 = vld [vmem:[#allocation4 + $0x80] sm:$0xff]  ;;  %v372_v13 = vld [vmem:[#allocation4 + $0x198] sm:$0xff] }
  0xa0   :  { %v196_v17 = vsub.f32 %v136_v15, %v194_v14  ;;  %310 = vmatmul.f32.vlgmr.msra.gmra.mxu1 %v136_v15  ;;  %339 = vmatpush.msra.mxu2 %v275_v12  ;;  %v371_v14 = vld [vmem:[#allocation4 + $0x190] sm:$0xff]  ;;  %v370_v15 = vld [vmem:[#allocation4 + $0x188] sm:$0xff] }
  0xa1   :  { %375 = vmatpush.msra.mxu3 %v372_v13  ;;  %v522_v13 = vld [vmem:[#allocation4 + $0x260] sm:$0xff] }
  0xa2   :  { %v198_v18 = vadd.f32 1e-12, %v196_v17  ;;  %v368_v17 = vld [vmem:[#allocation4 + $0x178] sm:$0xff]  ;;  %545 = vmatpush.msrb.mxu1 %v522_v13  ;;  %v791_v13 = vld [vmem:[#allocation4 + $0x330] sm:$0xff] }
  0xa3   :  { %376 = vmatpush.msra.mxu3 %v371_v14  ;;  %v521_v14 = vld [vmem:[#allocation4 + $0x258] sm:$0xff] }
  0xa4   :  { %v200_v19 = vmul.f32 %v198_v18, %v198_v18  ;;  %v367_v18 = vld [vmem:[#allocation4 + $0x170] sm:$0xff]  ;;  %546 = vmatpush.msrb.mxu1 %v521_v14  ;;  %v717_v14 = vld [vmem:[#allocation4 + $0x2a8] sm:$0xff] }
  0xa5   :  { %377 = vmatpush.msra.mxu3 %v370_v15  ;;  %v1107_v15 = vld [vmem:[#allocation4 + $0x238] ss:$0 sm:$0xff] }
  0xa6   :  { %v143_v20 = vpop.permute.xlu0 %142  ;;  %234 = vmatmul.f32.vlgmr.msra.gmra.mxu0 %v200_v19  ;;  %v74_v21 = vpop.permute.xlu1 %73  ;;  %v366_v19 = vld [vmem:[#allocation4 + $0x168] sm:$0xff] }
  0xa7   :  { %v122_v27 = vsel %vm120_vm1, %v119_v26, %v74_v21  ;;  %v183_v31 = vsel %vm117_vm0, %v1234_v8, %v143_v20  ;;  %v114_v37 = vpop.permute.xlu2 %113  ;;  %v365_v20 = vld [vmem:[#allocation4 + $0x160] sm:$0xff] }
  0xa8   :  { %v185_v34 = vsel %vm120_vm1, %v183_v31, %v149_v16  ;;  %v369_v16 = vld [vmem:[#allocation4 + $0x180] sm:$0xff]  ;;  %v358_v31 = vld [vmem:[#allocation4 + $0x128] sm:$0xff] }
  0xa9   :  { %378 = vmatpush.msra.mxu3 %v369_v16  ;;  %v361_v26 = vld [vmem:[#allocation4 + $0x140] sm:$0xff] }
  0xab   :  { %379 = vmatpush.msra.mxu3 %v368_v17 }
  0xad   :  { %380 = vmatpush.msra.mxu3 %v367_v18 }
  0xae   :  { %v82_v24 = vpop.permute.xlu0 %81  ;;  %v155_v25 = vpop.permute.xlu1 %154 }
  0xaf   :  { %v125_v29 = vsel %vm123_vm2, %v122_v27, %v82_v24  ;;  %v187_v36 = vsel %vm123_vm2, %v185_v34, %v155_v25  ;;  %381 = vmatpush.msra.mxu3 %v366_v19  ;;  %v363_v24 = vld [vmem:[#allocation4 + $0x150] sm:$0xff]  ;;  %v362_v25 = vld [vmem:[#allocation4 + $0x148] sm:$0xff] }
  0xb0   :  { %v128_v32 = vsel %vm126_vm3, %v125_v29, %v90_v22  ;;  %v364_v22 = vld [vmem:[#allocation4 + $0x158] sm:$0xff]  ;;  %v420_v34 = vld [vmem:[#allocation4 + $0x228] sm:$0xff] }
  0xb1   :  { %382 = vmatpush.msra.mxu3 %v365_v20  ;;  %v360_v29 = vld [vmem:[#allocation4 + $0x138] sm:$0xff] }
  0xb3   :  { %383 = vmatpush.msra.mxu3 %v364_v22 }
  0xb5   :  { %384 = vmatpush.msra.mxu3 %v363_v24 }
  0xb6   :  { %v161_v30 = vpop.permute.xlu0 %160  ;;  %v98_v33 = vpop.permute.xlu1 %97 }
  0xb7   :  { %v131_v35 = vsel %vm129_vm4, %v128_v32, %v98_v33  ;;  %v189_v40 = vsel %vm126_vm3, %v187_v36, %v161_v30  ;;  %385 = vmatpush.msra.mxu3 %v362_v25  ;;  %v359_v30 = vld [vmem:[#allocation4 + $0x130] sm:$0xff]  ;;  %v357_v32 = vld [vmem:[#allocation4 + $0x120] sm:$0xff]  ;;  %v418_v36 = vld [vmem:[#allocation4 + $0x218] sm:$0xff] }
  0xb8   :  { %v191_v42 = vsel %vm129_vm4, %v189_v40, %v167_v28  ;;  %v421_v33 = vld [vmem:[#allocation4 + $0x230] sm:$0xff] }
  0xb9   :  { %386 = vmatpush.msra.mxu3 %v361_v26  ;;  %440 = vmatpush.msrb.mxu2 %v421_v33  ;;  %v1108_v26 = vld [vmem:[#allocation4 + $0x250] ss:$0 sm:$0xff] }
  0xbb   :  { %387 = vmatpush.msra.mxu3 %v360_v29  ;;  %441 = vmatpush.msrb.mxu2 %v420_v34 }
  0xbd   :  { %388 = vmatpush.msra.mxu3 %v359_v30 }
  0xbe   :  { %v106_v38 = vpop.permute.xlu0 %105  ;;  %v173_v43 = vpop.permute.xlu1 %172 }
  0xbf   :  { %v134_v39 = vsel %vm132_vm5, %v131_v35, %v106_v38  ;;  %v193_v44 = vsel %vm132_vm5, %v191_v42, %v173_v43  ;;  %389 = vmatpush.msra.mxu3 %v358_v31  ;;  %v419_v35 = vld [vmem:[#allocation4 + $0x220] sm:$0xff]  ;;  %v1105_v38 = vld [vmem:[#allocation4 + $0x118] ss:$0 sm:$0xff] }
  0xc0   :  { %v137_v41 = vsel %vm135_vm6, %v134_v39, %v114_v37  ;;  %v417_v37 = vld [vmem:[#allocation4 + $0x210] sm:$0xff]  ;;  %v416_v39 = vld [vmem:[#allocation4 + $0x208] sm:$0xff]  ;;  %v415_v43 = vld [vmem:[#allocation4 + $0x200] sm:$0xff] }
  0xc1   :  { %313 = vmatmul.f32.gmra.mxu1 %v137_v41  ;;  %390 = vmatpush.msra.mxu3 %v357_v32 }
  0xc6   :  { %v179_v45 = vpop.permute.xlu0 %178 }
  0xc7   :  { %v195_v46 = vsel %vm135_vm6, %v193_v44, %v179_v45  ;;  %v414_v45 = vld [vmem:[#allocation4 + $0x1f8] sm:$0xff] }
  0xc8   :  { %v197_v47 = vsub.f32 %v137_v41, %v195_v46 }
  0xca   :  { %v199_v48 = vadd.f32 1e-12, %v197_v47  ;;  %v413_v47 = vld [vmem:[#allocation4 + $0x1f0] sm:$0xff] }
  0xcc   :  { %v201_v49 = vmul.f32 %v199_v48, %v199_v48  ;;  %v412_v48 = vld [vmem:[#allocation4 + $0x1e8] sm:$0xff] }
  0xce   :  { %237 = vmatmul.f32.gmra.mxu0 %v201_v49  ;;  %v411_v49 = vld [vmem:[#allocation4 + $0x1e0] sm:$0xff] }
 0x11d   :  { %v311_v40 = vpop.f32.mrf.mxu1 }
 0x123   :  { %v235_v50 = vpop.f32.mrf.mxu0 }
 0x124   :  { %1115 = vrsqrt.f32 %v235_v50  ;;  %vm248_vm7 = vcmp.eq.f32.partialorder %v235_v50, inf  ;;  %v251_v58 = vand.u32 2147483648, %v235_v50  ;;  %vm250_vm8 = vcmp.eq.f32.partialorder %v235_v50, 0.0 }
 0x12a   :  { %v1116_v51 = vpop.eup %1115 }
 0x12b   :  { %v242_v52 = vmul.f32 %v1116_v51, %v235_v50 }
 0x12d   :  { %v243_v53 = vmul.f32 %v1116_v51, %v242_v52  ;;  %v408_v52 = vld [vmem:[#allocation4 + $0x1c8] sm:$0xff] }
 0x12f   :  { %v244_v54 = vmul.f32 0.5, %v243_v53 }
 0x131   :  { %v245_v55 = vsub.f32 1.5, %v244_v54 }
 0x133   :  { %v246_v56 = vmul.f32 %v1116_v51, %v245_v55  ;;  %v409_v51 = vld [vmem:[#allocation4 + $0x1d0] sm:$0xff] }
 0x135   :  { %v247_v57 = vmul.f32 %v246_v56, %v235_v50  ;;  %v407_v56 = vld [vmem:[#allocation4 + $0x1c0] sm:$0xff] }
 0x137   :  { %v249_v59 = vsel %vm248_vm7, %v235_v50, %v247_v57  ;;  %v410_v50 = vld [vmem:[#allocation4 + $0x1d8] sm:$0xff] }
 0x138   :  { %v252_v60 = vsel %vm250_vm8, %v251_v58, %v249_v59  ;;  %v406_v59 = vld [vmem:[#allocation4 + $0x1b8] sm:$0xff] }
 0x139   :  { %267 = vrot.lane.b32.xlu1 %v252_v60, %s1180_s21  ;;  %v405_v60 = vld [vmem:[#allocation4 + $0x1b0] sm:$0xff] }
 0x13e   :  { %v314_v53 = vpop.f32.mrf.mxu1 }
 0x14b   :  { %v238_v63 = vpop.f32.mrf.mxu0 }
 0x14c   :  { %1117 = vrsqrt.f32 %v238_v63  ;;  %vm260_vm9 = vcmp.eq.f32.partialorder %v238_v63, inf  ;;  %v263_v9 = vand.u32 2147483648, %v238_v63  ;;  %vm262_vm10 = vcmp.eq.f32.partialorder %v238_v63, 0.0 }
 0x152   :  { %v1118_v1 = vpop.eup %1117 }
 0x153   :  { %v254_v2 = vmul.f32 %v1118_v1, %v238_v63 }
 0x155   :  { %v255_v3 = vmul.f32 %v1118_v1, %v254_v2 }
 0x157   :  { %v256_v4 = vmul.f32 0.5, %v255_v3 }
 0x159   :  { %v257_v5 = vsub.f32 1.5, %v256_v4 }
 0x15b   :  { %v258_v6 = vmul.f32 %v1118_v1, %v257_v5 }
 0x15d   :  { %v259_v7 = vmul.f32 %v258_v6, %v238_v63 }
 0x15f   :  { %v261_v10 = vsel %vm260_vm9, %v238_v63, %v259_v7  ;;  %v1106_v63 = vld [vmem:[#allocation4 + $0x1a0] ss:$0 sm:$0xff] }
 0x160   :  { %v264_v11 = vsel %vm262_vm10, %v263_v9, %v261_v10  ;;  %v482_v10 = vld [vmem:[#allocation4 + $0x240] sm:$0xff] }
 0x161   :  { %269 = vrot.lane.b32.xlu2 %v264_v11, %s1180_s21  ;;  %507 = vmatpush.msrb.mxu0 %v482_v10  ;;  %v719_v10 = vld [vmem:[#allocation4 + $0x2b8] sm:$0xff] }
 0x1ab   :  { %v268_v21 = vpop.permute.xlu1 %267 }
 0x1ac   :  { %v273_v23 = vsel %vm117_vm0, %v1207_v0, %v268_v21 }
 0x1ad   :  { %1076 = vmatmul.msk.f32.vlgmr.msra.gmra.mxu2 %vm317_vm11, %v273_v23 }
 0x1ae   :  { %449 = vmatpush.msra.mxu2 %v419_v35  ;;  %v1109_v35 = vld [vmem:[#allocation4 + $0x268] ss:$0 sm:$0xff] }
 0x1b0   :  { %450 = vmatpush.msra.mxu2 %v418_v36 }
 0x1b2   :  { %451 = vmatpush.msra.mxu2 %v417_v37 }
 0x1b4   :  { %452 = vmatpush.msra.mxu2 %v416_v39 }
 0x1b6   :  { %453 = vmatpush.msra.mxu2 %v415_v43 }
 0x1b8   :  { %454 = vmatpush.msra.mxu2 %v414_v45 }
 0x1ba   :  { %455 = vmatpush.msra.mxu2 %v413_v47 }
 0x1bb   :  { %v270_v27 = vpop.permute.xlu2 %269 }
 0x1bc   :  { %v274_v28 = vsel %vm117_vm0, %v1234_v8, %v270_v27  ;;  %456 = vmatpush.msra.mxu2 %v412_v48 }
 0x1bd   :  { %1077 = vmatmul.msk.f32.gmra.mxu2 %vm317_vm11, %v274_v28 }
 0x1be   :  { %457 = vmatpush.msra.mxu2 %v411_v49 }
 0x1c0   :  { %458 = vmatpush.msra.mxu2 %v410_v50 }
 0x1c2   :  { %459 = vmatpush.msra.mxu2 %v409_v51 }
 0x1c4   :  { %460 = vmatpush.msra.mxu2 %v408_v52 }
 0x1c5   :  { %1078 = vmatmul.msk.f32.vlgmr.msrb.gmra.mxu2 %vm117_vm0, %v1207_v0 }
 0x1c6   :  { %461 = vmatpush.msra.mxu2 %v407_v56 }
 0x1c8   :  { %462 = vmatpush.msra.mxu2 %v406_v59  ;;  %v725_v59 = vld [vmem:[#allocation4 + $0x2e8] sm:$0xff] }
 0x1c9   :  { %726 = vmatpush.msrb.mxu3 %v725_v59 }
 0x1ca   :  { %463 = vmatpush.msra.mxu2 %v405_v60  ;;  %v798_v60 = vld [vmem:[#allocation4 + $0x368] sm:$0xff] }
 0x1cc   :  { %464 = vmatpush.msra.mxu2 %v404_v61  ;;  %v724_v61 = vld [vmem:[#allocation4 + $0x2e0] sm:$0xff] }
 0x1cd   :  { %1079 = vmatmul.msk.f32.gmra.mxu2 %vm117_vm0, %v1234_v8  ;;  %727 = vmatpush.msrb.mxu3 %v724_v61 }
 0x230   :  { %v341_v41 = vpop.f32.mrf.mxu2 }
 0x231   :  { %v342_v42 = vadd.f32 %v341_v41, %v311_v40 }
 0x233   :  { %v349_v44 = vadd.f32 %v1105_v38, %v342_v42 }
 0x235   :  { %vm351_vm12 = vcmp.ge.f32.partialorder %v349_v44, 0.0  ;;  %v353_v46 = vmul.f32 0.1, %v349_v44 }
 0x237   :  { %v355_v0 = vsel %vm351_vm12, %v349_v44, %v353_v46 }
 0x238   :  { %391 = vmatmul.f32.vlgmr.msra.gmra.mxu3 %v355_v0 }
 0x240   :  { %v344_v54 = vpop.f32.mrf.mxu2 }
 0x241   :  { %v345_v55 = vadd.f32 %v344_v54, %v314_v53 }
 0x243   :  { %v350_v57 = vadd.f32 %v1105_v38, %v345_v55 }
 0x245   :  { %vm352_vm13 = vcmp.ge.f32.partialorder %v350_v57, 0.0  ;;  %v354_v8 = vmul.f32 0.1, %v350_v57 }
 0x247   :  { %v356_v58 = vsel %vm352_vm13, %v350_v57, %v354_v8  ;;  %v801_v57 = vld [vmem:[#allocation4 + $0x380] sm:$0xff]  ;;  %v800_v8 = vld [vmem:[#allocation4 + $0x378] sm:$0xff] }
 0x248   :  { %394 = vmatmul.f32.gmra.mxu3 %v356_v58  ;;  %v443_v11 = vpop.f32.mrf.mxu2  ;;  %802 = vmatpush.msra.mxu0 %v801_v57  ;;  %v799_v58 = vld [vmem:[#allocation4 + $0x370] sm:$0xff] }
 0x24a   :  { %803 = vmatpush.msra.mxu0 %v800_v8 }
 0x24c   :  { %804 = vmatpush.msra.mxu0 %v799_v58 }
 0x24e   :  { %805 = vmatpush.msra.mxu0 %v798_v60 }
 0x250   :  { %v446_v12 = vpop.f32.mrf.mxu2  ;;  %806 = vmatpush.msra.mxu0 %v797_v62 }
 0x2bb   :  { %v392_v1 = vpop.f32.mrf.mxu3 }
 0x2bc   :  { %v393_v2 = vadd.f32 %v1106_v63, %v392_v1  ;;  %v796_v1 = vld [vmem:[#allocation4 + $0x358] sm:$0xff] }
 0x2bd   :  { %807 = vmatpush.msra.mxu0 %v796_v1 }
 0x2be   :  { %vm398_vm14 = vcmp.ge.f32.partialorder %v393_v2, 0.0  ;;  %v400_v3 = vmul.f32 0.1, %v393_v2 }
 0x2c0   :  { %v402_v4 = vsel %vm398_vm14, %v393_v2, %v400_v3  ;;  %v722_v2 = vld [vmem:[#allocation4 + $0x2d0] sm:$0xff] }
 0x2c1   :  { %465 = vmatmul.f32.vlgmr.msra.gmra.mxu2 %v402_v4  ;;  %v795_v3 = vld [vmem:[#allocation4 + $0x350] sm:$0xff] }
 0x2c2   :  { %808 = vmatpush.msra.mxu0 %v795_v3 }
 0x2cb   :  { %v395_v5 = vpop.f32.mrf.mxu3 }
 0x2cc   :  { %v396_v6 = vadd.f32 %v1106_v63, %v395_v5  ;;  %v723_v63 = vld [vmem:[#allocation4 + $0x2d8] sm:$0xff]  ;;  %v721_v5 = vld [vmem:[#allocation4 + $0x2c8] sm:$0xff] }
 0x2cd   :  { %728 = vmatpush.msrb.mxu3 %v723_v63 }
 0x2ce   :  { %vm399_vm15 = vcmp.ge.f32.partialorder %v396_v6, 0.0  ;;  %v401_v7 = vmul.f32 0.1, %v396_v6 }
 0x2cf   :  { %729 = vmatpush.msrb.mxu3 %v722_v2 }
 0x2d0   :  { %v403_v9 = vsel %vm399_vm15, %v396_v6, %v401_v7  ;;  %v794_v6 = vld [vmem:[#allocation4 + $0x348] sm:$0xff]  ;;  %v720_v7 = vld [vmem:[#allocation4 + $0x2c0] sm:$0xff] }
 0x2d1   :  { %468 = vmatmul.f32.gmra.mxu2 %v403_v9  ;;  %730 = vmatpush.msrb.mxu3 %v721_v5  ;;  %v793_v9 = vld [vmem:[#allocation4 + $0x340] sm:$0xff] }
 0x2d2   :  { %809 = vmatpush.msra.mxu0 %v794_v6 }
 0x2d3   :  { %731 = vmatpush.msrb.mxu3 %v720_v7 }
 0x2d4   :  { %810 = vmatpush.msra.mxu0 %v793_v9 }
 0x2d5   :  { %732 = vmatpush.msrb.mxu3 %v719_v10 }
 0x344   :  { %v466_v16 = vpop.f32.mrf.mxu2 }
 0x345   :  { %v467_v17 = vadd.f32 %v466_v16, %v443_v11  ;;  %v792_v11 = vld [vmem:[#allocation4 + $0x338] sm:$0xff] }
 0x346   :  { %811 = vmatpush.msra.mxu0 %v792_v11 }
 0x347   :  { %v474_v18 = vadd.f32 %v1107_v15, %v467_v17  ;;  %v716_v17 = vld [vmem:[#allocation4 + $0x2a0] sm:$0xff] }
 0x348   :  { %812 = vmatpush.msra.mxu0 %v791_v13 }
 0x349   :  { %v478_v19 = vmul.f32 0.1, %v474_v18  ;;  %vm476_vm7 = vcmp.ge.f32.partialorder %v474_v18, 0.0 }
 0x34b   :  { %v480_v20 = vsel %vm476_vm7, %v474_v18, %v478_v19  ;;  %v789_v18 = vld [vmem:[#allocation4 + $0x320] sm:$0xff]  ;;  %v715_v19 = vld [vmem:[#allocation4 + $0x298] sm:$0xff] }
 0x34c   :  { %1080 = vmatmul.msk.f32.vlgmr.msrb.gmra.mxu0 %vm117_vm0, %v480_v20  ;;  %v788_v20 = vld [vmem:[#allocation4 + $0x318] sm:$0xff] }
 0x354   :  { %v469_v21 = vpop.f32.mrf.mxu2 }
 0x355   :  { %v470_v22 = vadd.f32 %v469_v21, %v446_v12  ;;  %v718_v12 = vld [vmem:[#allocation4 + $0x2b0] sm:$0xff] }
 0x356   :  { %733 = vmatpush.msrb.mxu3 %v718_v12  ;;  %v714_v21 = vld [vmem:[#allocation4 + $0x290] sm:$0xff] }
 0x357   :  { %v475_v23 = vadd.f32 %v1107_v15, %v470_v22  ;;  %v790_v15 = vld [vmem:[#allocation4 + $0x328] sm:$0xff]  ;;  %v787_v22 = vld [vmem:[#allocation4 + $0x310] sm:$0xff] }
 0x358   :  { %734 = vmatpush.msrb.mxu3 %v717_v14  ;;  %813 = vmatpush.msra.mxu0 %v790_v15 }
 0x359   :  { %vm477_vm8 = vcmp.ge.f32.partialorder %v475_v23, 0.0  ;;  %v479_v24 = vmul.f32 0.1, %v475_v23 }
 0x35a   :  { %735 = vmatpush.msrb.mxu3 %v716_v17  ;;  %814 = vmatpush.msra.mxu0 %v789_v18 }
 0x35b   :  { %v481_v25 = vsel %vm477_vm8, %v475_v23, %v479_v24 }
 0x35c   :  { %1081 = vmatmul.msk.f32.gmra.mxu0 %vm117_vm0, %v481_v25  ;;  %736 = vmatpush.msrb.mxu3 %v715_v19  ;;  %v713_v25 = vld [vmem:[#allocation4 + $0x288] sm:$0xff] }
 0x35d   :  { %815 = vmatpush.msra.mxu0 %v788_v20 }
 0x35e   :  { %737 = vmatpush.msrb.mxu3 %v714_v21 }
 0x35f   :  { %816 = vmatpush.msra.mxu0 %v787_v22 }
 0x360   :  { %738 = vmatpush.msrb.mxu3 %v713_v25 }
 0x3c9   :  { %v509_v27 = vpop.f32.mrf.mxu0 }
 0x3ca   :  { %v510_v28 = vadd.f32 %v1108_v26, %v509_v27  ;;  %v712_v27 = vld [vmem:[#allocation4 + $0x280] sm:$0xff] }
 0x3cb   :  { %739 = vmatpush.msrb.mxu3 %v712_v27 }
 0x3cc   :  { %vm515_vm9 = vcmp.ge.f32.partialorder %v510_v28, 0.0  ;;  %v517_v29 = vmul.f32 0.1, %v510_v28 }
 0x3ce   :  { %v519_v30 = vsel %vm515_vm9, %v510_v28, %v517_v29  ;;  %v711_v29 = vld [vmem:[#allocation4 + $0x278] sm:$0xff] }
 0x3cf   :  { %1082 = vmatmul.msk.f32.vlgmr.msrb.gmra.mxu1 %vm117_vm0, %v519_v30  ;;  %740 = vmatpush.msrb.mxu3 %v711_v29 }
 0x3d9   :  { %v512_v31 = vpop.f32.mrf.mxu0 }
 0x3da   :  { %v513_v32 = vadd.f32 %v1108_v26, %v512_v31  ;;  %v786_v26 = vld [vmem:[#allocation4 + $0x308] sm:$0xff]  ;;  %v710_v31 = vld [vmem:[#allocation4 + $0x270] sm:$0xff] }
 0x3db   :  { %817 = vmatpush.msra.mxu0 %v786_v26  ;;  %741 = vmatpush.msrb.mxu3 %v710_v31 }
 0x3dc   :  { %v518_v33 = vmul.f32 0.1, %v513_v32  ;;  %vm516_vm10 = vcmp.ge.f32.partialorder %v513_v32, 0.0 }
 0x3de   :  { %v520_v34 = vsel %vm516_vm10, %v513_v32, %v518_v33 }
 0x3df   :  { %1083 = vmatmul.msk.f32.gmra.mxu1 %vm117_vm0, %v520_v34 }
 0x44c   :  { %v548_v36 = vpop.f32.mrf.mxu1 }
 0x44d   :  { %v549_v37 = vadd.f32 %v1109_v35, %v548_v36 }
 0x44f   :  { %vm554_vm12 = vcmp.ge.f32.partialorder %v549_v37, 0.0  ;;  %v556_v38 = vmul.f32 0.1, %v549_v37 }
 0x451   :  { %v1318_v39 = vsel %vm554_vm12, %v549_v37, %v556_v38  ;;  %vm1067_vm12 = vcmask 31744  }
 0x452   :  { %660 = vrot.lane.b32.xlu2 %v1318_v39, %s1181_s1  ;;  %654 = vrot.lane.b32.xlu0 %v1318_v39, %s1179_s0  ;;  %v564_v40 = vperm.slane %v1318_v39, 2  ;;  %v562_v41 = vperm.slane %v1318_v39, 1  ;;  %v570_v43 = vperm.slane %v1318_v39, 5  ;;  %v568_v44 = vperm.slane %v1318_v39, 4 }
 0x453   :  { %648 = vrot.lane.b32.xlu1 %v1318_v39, %s1180_s21  ;;  %v566_v46 = vperm.slane %v1318_v39, 3  ;;  %v574_v0 = vperm.slane %v1318_v39, 7  ;;  %v572_v49 = vperm.slane %v1318_v39, 6  ;;  %v560_v37 = vperm.slane %v1318_v39, 0 }
 0x45a   :  { %678 = vrot.lane.b32.xlu2 %v1318_v39, %s1184_s24  ;;  %672 = vrot.lane.b32.xlu0 %v1318_v39, %s1183_s23 }
 0x45b   :  { %666 = vrot.lane.b32.xlu1 %v1318_v39, %s1182_s22 }
 0x45c   :  { %v551_v42 = vpop.f32.mrf.mxu1 }
 0x45d   :  { %v552_v45 = vadd.f32 %v1109_v35, %v551_v42 }
 0x45f   :  { %v557_v47 = vmul.f32 0.1, %v552_v45  ;;  %vm555_vm13 = vcmp.ge.f32.partialorder %v552_v45, 0.0 }
 0x461   :  { %v1345_v48 = vsel %vm555_vm13, %v552_v45, %v557_v47 }
 0x462   :  { %586 = vrot.lane.b32.xlu2 %v564_v40, %s1179_s0  ;;  %578 = vrot.lane.b32.xlu0 %v562_v41, %s1180_s21  ;;  %v563_v50 = vperm.slane %v1345_v48, 1  ;;  %v565_v51 = vperm.slane %v1345_v48, 2  ;;  %v567_v52 = vperm.slane %v1345_v48, 3  ;;  %v569_v53 = vperm.slane %v1345_v48, 4 }
 0x463   :  { %684 = vrot.lane.b32.xlu1 %v1318_v39, %s1185_s25  ;;  %v571_v54 = vperm.slane %v1345_v48, 5  ;;  %v573_v55 = vperm.slane %v1345_v48, 6  ;;  %v575_v56 = vperm.slane %v1345_v48, 7  ;;  %v561_v2 = vperm.slane %v1345_v48, 0 }
 0x46a   :  { %610 = vrot.lane.b32.xlu2 %v570_v43, %s1183_s23  ;;  %602 = vrot.lane.b32.xlu0 %v568_v44, %s1182_s22 }
 0x46b   :  { %594 = vrot.lane.b32.xlu1 %v566_v46, %s1181_s1 }
 0x472   :  { %626 = vrot.lane.b32.xlu0 %v574_v0, %s1185_s25  ;;  %656 = vrot.lane.b32.xlu2 %v1345_v48, %s1179_s0 }
 0x473   :  { %618 = vrot.lane.b32.xlu1 %v572_v49, %s1184_s24 }
 0x47a   :  { %674 = vrot.lane.b32.xlu2 %v1345_v48, %s1183_s23  ;;  %650 = vrot.lane.b32.xlu0 %v1345_v48, %s1180_s21 }
 0x47b   :  { %662 = vrot.lane.b32.xlu1 %v1345_v48, %s1181_s1 }
 0x482   :  { %668 = vrot.lane.b32.xlu0 %v1345_v48, %s1182_s22  ;;  %580 = vrot.lane.b32.xlu2 %v563_v50, %s1180_s21 }
 0x483   :  { %588 = vrot.lane.b32.xlu1 %v565_v51, %s1179_s0 }
 0x48a   :  { %596 = vrot.lane.b32.xlu0 %v567_v52, %s1181_s1  ;;  %604 = vrot.lane.b32.xlu2 %v569_v53, %s1182_s22 }
 0x48b   :  { %612 = vrot.lane.b32.xlu1 %v571_v54, %s1183_s23 }
 0x492   :  { %620 = vrot.lane.b32.xlu0 %v573_v55, %s1184_s24  ;;  %628 = vrot.lane.b32.xlu2 %v575_v56, %s1185_s25 }
 0x493   :  { %680 = vrot.lane.b32.xlu1 %v1345_v48, %s1184_s24 }
 0x49a   :  { %686 = vrot.lane.b32.xlu0 %v1345_v48, %s1185_s25 }
 0x4ac   :  { %v1378_v4 = vpop.permute.xlu2 %660 }
 0x4b4   :  { %v679_v16 = vpop.permute.xlu2 %678 }
 0x4bc   :  { %v587_v28 = vpop.permute.xlu2 %586 }
 0x4c4   :  { %v655_v23 = vpop.permute.xlu0 %654  ;;  %v611_v33 = vpop.permute.xlu2 %610 }
 0x4c5   :  { %v649_v24 = vpop.permute.xlu1 %648 }
 0x4c6   :  { %v690_v36 = vsel %vm117_vm0, %v1318_v39, %v649_v24 }
 0x4c7   :  { %v692_v40 = vsel %vm120_vm1, %v690_v36, %v655_v23 }
 0x4c8   :  { %v694_v45 = vsel %vm123_vm2, %v692_v40, %v1378_v4  ;;  %v785_v40 = vld [vmem:[#allocation4 + $0x300] sm:$0xff] }
 0x4c9   :  { %844 = vmatpush.msra.mxu1 %v785_v40  ;;  %v911_v40 = vld [vmem:[#allocation4 + $0x418] sm:$0xff] }
 0x4cc   :  { %v673_v30 = vpop.permute.xlu0 %672  ;;  %v657_v42 = vpop.permute.xlu2 %656 }
 0x4cd   :  { %v667_v32 = vpop.permute.xlu1 %666 }
 0x4ce   :  { %v696_v47 = vsel %vm126_vm3, %v694_v45, %v667_v32 }
 0x4cf   :  { %v698_v49 = vsel %vm129_vm4, %v696_v47, %v673_v30 }
 0x4d0   :  { %v700_v53 = vsel %vm132_vm5, %v698_v49, %v679_v16 }
 0x4d4   :  { %v579_v34 = vpop.permute.xlu0 %578  ;;  %v675_v56 = vpop.permute.xlu2 %674 }
 0x4d5   :  { %v685_v35 = vpop.permute.xlu1 %684  ;;  %v632_v38 = vsel %vm117_vm0, %v560_v37, %v579_v34 }
 0x4d6   :  { %v634_v44 = vsel %vm120_vm1, %v632_v38, %v587_v28  ;;  %v702_v55 = vsel %vm135_vm6, %v700_v53, %v685_v35  ;;  %v783_v53 = vld [vmem:[#allocation4 + $0x2f0] sm:$0xff] }
 0x4dc   :  { %v603_v41 = vpop.permute.xlu0 %602  ;;  %v581_v62 = vpop.permute.xlu2 %580 }
 0x4dd   :  { %v595_v43 = vpop.permute.xlu1 %594  ;;  %v633_v4 = vsel %vm117_vm0, %v561_v2, %v581_v62  ;;  %v874_v62 = vld [vmem:[#allocation4 + $0x3e0] sm:$0xff] }
 0x4de   :  { %v636_v46 = vsel %vm123_vm2, %v634_v44, %v595_v43 }
 0x4df   :  { %v638_v0 = vsel %vm126_vm3, %v636_v46, %v603_v41  ;;  %v784_v41 = vld [vmem:[#allocation4 + $0x2f8] sm:$0xff] }
 0x4e0   :  { %v640_v52 = vsel %vm129_vm4, %v638_v0, %v611_v33  ;;  %845 = vmatpush.msra.mxu1 %v784_v41  ;;  %v1111_v41 = vld [vmem:[#allocation4 + $0x410] ss:$0 sm:$0xff] }
 0x4e2   :  { %846 = vmatpush.msra.mxu1 %v783_v53 }
 0x4e4   :  { %v627_v50 = vpop.permute.xlu0 %626  ;;  %v605_v3 = vpop.permute.xlu2 %604 }
 0x4e5   :  { %v619_v51 = vpop.permute.xlu1 %618 }
 0x4e6   :  { %v642_v54 = vsel %vm132_vm5, %v640_v52, %v619_v51 }
 0x4e7   :  { %v644_v57 = vsel %vm135_vm6, %v642_v54, %v627_v50  ;;  %v928_v54 = vld [vmem:[#allocation4 + $0x4a0] sm:$0xff] }
 0x4e8   :  { %v704_v8 = vsub.f32 %v644_v57, %v702_v55  ;;  %818 = vmatmul.f32.vlgmr.msra.gmra.mxu0 %v644_v57  ;;  %v927_v55 = vld [vmem:[#allocation4 + $0x498] sm:$0xff]  ;;  %947 = vmatpush.msrb.mxu1 %v928_v54  ;;  %v879_v57 = vld [vmem:[#allocation4 + $0x408] sm:$0xff] }
 0x4e9   :  { %882 = vmatpush.msrb.mxu2 %v879_v57 }
 0x4ea   :  { %v706_v58 = vadd.f32 1e-12, %v704_v8  ;;  %948 = vmatpush.msrb.mxu1 %v927_v55  ;;  %v878_v8 = vld [vmem:[#allocation4 + $0x400] sm:$0xff] }
 0x4eb   :  { %883 = vmatpush.msrb.mxu2 %v878_v8 }
 0x4ec   :  { %v708_v59 = vmul.f32 %v706_v58, %v706_v58  ;;  %v651_v60 = vpop.permute.xlu0 %650  ;;  %v629_v15 = vpop.permute.xlu2 %628 }
 0x4ed   :  { %v663_v61 = vpop.permute.xlu1 %662  ;;  %v691_v10 = vsel %vm117_vm0, %v1345_v48, %v651_v60  ;;  %v876_v60 = vld [vmem:[#allocation4 + $0x3f0] sm:$0xff] }
 0x4ee   :  { %742 = vmatmul.f32.vlgmr.msrb.gmra.mxu3 %v708_v59  ;;  %v693_v12 = vsel %vm120_vm1, %v691_v10, %v657_v42  ;;  %v877_v59 = vld [vmem:[#allocation4 + $0x3f8] sm:$0xff]  ;;  %v866_v10 = vld [vmem:[#allocation4 + $0x3a0] sm:$0xff] }
 0x4ef   :  { %v695_v18 = vsel %vm123_vm2, %v693_v12, %v663_v61  ;;  %884 = vmatpush.msrb.mxu2 %v877_v59  ;;  %v875_v61 = vld [vmem:[#allocation4 + $0x3e8] sm:$0xff]  ;;  %v864_v12 = vld [vmem:[#allocation4 + $0x390] sm:$0xff] }
 0x4f1   :  { %885 = vmatpush.msrb.mxu2 %v876_v60 }
 0x4f3   :  { %886 = vmatpush.msrb.mxu2 %v875_v61 }
 0x4f4   :  { %v669_v63 = vpop.permute.xlu0 %668 }
 0x4f5   :  { %v589_v1 = vpop.permute.xlu1 %588  ;;  %v697_v19 = vsel %vm126_vm3, %v695_v18, %v669_v63  ;;  %v873_v63 = vld [vmem:[#allocation4 + $0x3d8] sm:$0xff]  ;;  %887 = vmatpush.msrb.mxu2 %v874_v62  ;;  %v924_v18 = vld [vmem:[#allocation4 + $0x480] sm:$0xff] }
 0x4f6   :  { %v635_v6 = vsel %vm120_vm1, %v633_v4, %v589_v1  ;;  %v699_v21 = vsel %vm129_vm4, %v697_v19, %v675_v56  ;;  %v872_v1 = vld [vmem:[#allocation4 + $0x3d0] sm:$0xff] }
 0x4f7   :  { %888 = vmatpush.msrb.mxu2 %v873_v63 }
 0x4f9   :  { %889 = vmatpush.msrb.mxu2 %v872_v1  ;;  %v1029_v1 = vld [vmem:[#allocation4 + $0x4d0] sm:$0xff] }
 0x4fc   :  { %v597_v5 = vpop.permute.xlu0 %596 }
 0x4fd   :  { %v637_v7 = vsel %vm123_vm2, %v635_v6, %v597_v5  ;;  %v613_v9 = vpop.permute.xlu1 %612  ;;  %v870_v5 = vld [vmem:[#allocation4 + $0x3c0] sm:$0xff]  ;;  %v869_v6 = vld [vmem:[#allocation4 + $0x3b8] sm:$0xff] }
 0x4fe   :  { %v639_v11 = vsel %vm126_vm3, %v637_v7, %v605_v3  ;;  %v871_v3 = vld [vmem:[#allocation4 + $0x3c8] sm:$0xff]  ;;  %v868_v7 = vld [vmem:[#allocation4 + $0x3b0] sm:$0xff] }
 0x4ff   :  { %v641_v13 = vsel %vm129_vm4, %v639_v11, %v613_v9  ;;  %890 = vmatpush.msrb.mxu2 %v871_v3  ;;  %v867_v9 = vld [vmem:[#allocation4 + $0x3a8] sm:$0xff]  ;;  %v865_v11 = vld [vmem:[#allocation4 + $0x398] sm:$0xff]  ;;  %v1113_v3 = vld [vmem:[#allocation4 + $0x4c0] ss:$0 sm:$0xff] }
 0x501   :  { %891 = vmatpush.msrb.mxu2 %v870_v5 }
 0x503   :  { %892 = vmatpush.msrb.mxu2 %v869_v6 }
 0x504   :  { %v621_v14 = vpop.permute.xlu0 %620 }
 0x505   :  { %v643_v16 = vsel %vm132_vm5, %v641_v13, %v621_v14  ;;  %v681_v20 = vpop.permute.xlu1 %680  ;;  %893 = vmatpush.msrb.mxu2 %v868_v7  ;;  %v926_v13 = vld [vmem:[#allocation4 + $0x490] sm:$0xff]  ;;  %v925_v14 = vld [vmem:[#allocation4 + $0x488] sm:$0xff] }
 0x506   :  { %v645_v17 = vsel %vm135_vm6, %v643_v16, %v629_v15  ;;  %v701_v22 = vsel %vm132_vm5, %v699_v21, %v681_v20  ;;  %v1110_v15 = vld [vmem:[#allocation4 + $0x388] ss:$0 sm:$0xff]  ;;  %956 = vmatpush.msra.mxu3 %v926_v13  ;;  %v1114_v13 = vld [vmem:[#allocation4 + $0x4d8] ss:$0 sm:$0xff] }
 0x507   :  { %821 = vmatmul.f32.gmra.mxu0 %v645_v17  ;;  %894 = vmatpush.msrb.mxu2 %v867_v9 }
 0x508   :  { %957 = vmatpush.msra.mxu3 %v925_v14 }
 0x509   :  { %895 = vmatpush.msrb.mxu2 %v866_v10 }
 0x50a   :  { %958 = vmatpush.msra.mxu3 %v924_v18 }
 0x50b   :  { %896 = vmatpush.msrb.mxu2 %v865_v11 }
 0x50c   :  { %v687_v23 = vpop.permute.xlu0 %686 }
 0x50d   :  { %v703_v24 = vsel %vm135_vm6, %v701_v22, %v687_v23  ;;  %897 = vmatpush.msrb.mxu2 %v864_v12  ;;  %v921_v22 = vld [vmem:[#allocation4 + $0x468] sm:$0xff] }
 0x50e   :  { %v705_v25 = vsub.f32 %v645_v17, %v703_v24  ;;  %v920_v24 = vld [vmem:[#allocation4 + $0x460] sm:$0xff] }
 0x510   :  { %v707_v26 = vadd.f32 1e-12, %v705_v25  ;;  %v919_v25 = vld [vmem:[#allocation4 + $0x458] sm:$0xff] }
 0x512   :  { %v709_v27 = vmul.f32 %v707_v26, %v707_v26  ;;  %v918_v26 = vld [vmem:[#allocation4 + $0x450] sm:$0xff] }
 0x514   :  { %745 = vmatmul.f32.gmra.mxu3 %v709_v27 }
 0x565   :  { %v819_v16 = vpop.f32.mrf.mxu0 }
 0x571   :  { %v743_v28 = vpop.f32.mrf.mxu3 }
 0x572   :  { %1119 = vrsqrt.f32 %v743_v28  ;;  %vm756_vm1 = vcmp.eq.f32.partialorder %v743_v28, inf  ;;  %v759_v36 = vand.u32 2147483648, %v743_v28  ;;  %vm758_vm2 = vcmp.eq.f32.partialorder %v743_v28, 0.0 }
 0x578   :  { %v1120_v29 = vpop.eup %1119 }
 0x579   :  { %v750_v30 = vmul.f32 %v1120_v29, %v743_v28 }
 0x57b   :  { %v751_v31 = vmul.f32 %v1120_v29, %v750_v30 }
 0x57d   :  { %v752_v32 = vmul.f32 0.5, %v751_v31  ;;  %v916_v31 = vld [vmem:[#allocation4 + $0x440] sm:$0xff] }
 0x57f   :  { %v753_v33 = vsub.f32 1.5, %v752_v32 }
 0x581   :  { %v754_v34 = vmul.f32 %v1120_v29, %v753_v33  ;;  %v917_v29 = vld [vmem:[#allocation4 + $0x448] sm:$0xff]  ;;  %v915_v33 = vld [vmem:[#allocation4 + $0x438] sm:$0xff] }
 0x583   :  { %v755_v35 = vmul.f32 %v754_v34, %v743_v28 }
 0x584   :  { %v822_v27 = vpop.f32.mrf.mxu0 }
 0x585   :  { %v757_v37 = vsel %vm756_vm1, %v743_v28, %v755_v35  ;;  %v914_v35 = vld [vmem:[#allocation4 + $0x430] sm:$0xff] }
 0x586   :  { %v760_v38 = vsel %vm758_vm2, %v759_v36, %v757_v37  ;;  %v913_v37 = vld [vmem:[#allocation4 + $0x428] sm:$0xff] }
 0x587   :  { %775 = vrot.lane.b32.xlu1 %v760_v38, %s1180_s21  ;;  %v912_v38 = vld [vmem:[#allocation4 + $0x420] sm:$0xff] }
 0x597   :  { %v746_v42 = vpop.f32.mrf.mxu3 }
 0x598   :  { %1121 = vrsqrt.f32 %v746_v42  ;;  %vm768_vm3 = vcmp.eq.f32.partialorder %v746_v42, inf  ;;  %v771_v50 = vand.u32 2147483648, %v746_v42  ;;  %vm770_vm4 = vcmp.eq.f32.partialorder %v746_v42, 0.0 }
 0x59e   :  { %v1122_v43 = vpop.eup %1121 }
 0x59f   :  { %v762_v44 = vmul.f32 %v1122_v43, %v746_v42 }
 0x5a1   :  { %v763_v45 = vmul.f32 %v1122_v43, %v762_v44 }
 0x5a3   :  { %v764_v46 = vmul.f32 0.5, %v763_v45 }
 0x5a5   :  { %v765_v47 = vsub.f32 1.5, %v764_v46 }
 0x5a7   :  { %v766_v0 = vmul.f32 %v1122_v43, %v765_v47 }
 0x5a9   :  { %v767_v49 = vmul.f32 %v766_v0, %v746_v42 }
 0x5ab   :  { %v769_v51 = vsel %vm768_vm3, %v746_v42, %v767_v49 }
 0x5ac   :  { %v772_v52 = vsel %vm770_vm4, %v771_v50, %v769_v51  ;;  %v990_v50 = vld [vmem:[#allocation4 + $0x4b8] sm:$0xff]  ;;  %v989_v51 = vld [vmem:[#allocation4 + $0x4b0] sm:$0xff] }
 0x5ad   :  { %777 = vrot.lane.b32.xlu2 %v772_v52, %s1180_s21  ;;  %1013 = vmatpush.msrb.mxu0 %v990_v50  ;;  %v1112_v52 = vld [vmem:[#allocation4 + $0x4a8] ss:$0 sm:$0xff] }
 0x5ae   :  { %1092 = vmatpush.msra.mxu2 %v990_v50 }
 0x5af   :  { %1014 = vmatpush.msrb.mxu0 %v989_v51 }
 0x5b0   :  { %1093 = vmatpush.msra.mxu2 %v989_v51 }
 0x5f9   :  { %v776_v56 = vpop.permute.xlu1 %775 }
 0x5fa   :  { %v781_v58 = vsel %vm117_vm0, %v1318_v39, %v776_v56 }
 0x5fb   :  { %1084 = vmatmul.msk.f32.vlgmr.msra.gmra.mxu1 %vm317_vm11, %v781_v58 }
 0x5fc   :  { %1052 = vmatpush.msra.mxu1 %v1029_v1 }
 0x607   :  { %v778_v2 = vpop.permute.xlu2 %777 }
 0x608   :  { %v782_v4 = vsel %vm117_vm0, %v1345_v48, %v778_v2  ;;  %v1028_v2 = vld [vmem:[#allocation4 + $0x4c8] sm:$0xff] }
 0x609   :  { %1085 = vmatmul.msk.f32.gmra.mxu1 %vm317_vm11, %v782_v4 }
 0x60a   :  { %1053 = vmatpush.msra.mxu1 %v1028_v2 }
 0x611   :  { %1086 = vmatmul.msk.f32.vlgmr.msrb.gmra.mxu1 %vm117_vm0, %v1318_v39  ;;  %v923_v39 = vld [vmem:[#allocation4 + $0x478] sm:$0xff] }
 0x612   :  { %959 = vmatpush.msra.mxu3 %v923_v39 }
 0x619   :  { %1087 = vmatmul.msk.f32.gmra.mxu1 %vm117_vm0, %v1345_v48  ;;  %v922_v48 = vld [vmem:[#allocation4 + $0x470] sm:$0xff] }
 0x61a   :  { %960 = vmatpush.msra.mxu3 %v922_v48 }
 0x61c   :  { %961 = vmatpush.msra.mxu3 %v921_v22 }
 0x61e   :  { %962 = vmatpush.msra.mxu3 %v920_v24 }
 0x620   :  { %963 = vmatpush.msra.mxu3 %v919_v25 }
 0x622   :  { %964 = vmatpush.msra.mxu3 %v918_v26 }
 0x624   :  { %965 = vmatpush.msra.mxu3 %v917_v29 }
 0x626   :  { %966 = vmatpush.msra.mxu3 %v916_v31 }
 0x628   :  { %967 = vmatpush.msra.mxu3 %v915_v33 }
 0x62a   :  { %968 = vmatpush.msra.mxu3 %v914_v35 }
 0x62c   :  { %969 = vmatpush.msra.mxu3 %v913_v37 }
 0x62e   :  { %970 = vmatpush.msra.mxu3 %v912_v38 }
 0x630   :  { %971 = vmatpush.msra.mxu3 %v911_v40 }
 0x678   :  { %v848_v17 = vpop.f32.mrf.mxu1 }
 0x679   :  { %v849_v19 = vadd.f32 %v848_v17, %v819_v16 }
 0x67b   :  { %v856_v20 = vadd.f32 %v1110_v15, %v849_v19 }
 0x67d   :  { %v860_v21 = vmul.f32 0.1, %v856_v20  ;;  %vm858_vm5 = vcmp.ge.f32.partialorder %v856_v20, 0.0 }
 0x67f   :  { %v862_v23 = vsel %vm858_vm5, %v856_v20, %v860_v21 }
 0x680   :  { %898 = vmatmul.f32.vlgmr.msrb.gmra.mxu2 %v862_v23 }
 0x686   :  { %v851_v28 = vpop.f32.mrf.mxu1 }
 0x687   :  { %v852_v30 = vadd.f32 %v851_v28, %v822_v27 }
 0x689   :  { %v857_v32 = vadd.f32 %v1110_v15, %v852_v30 }
 0x68b   :  { %vm859_vm6 = vcmp.ge.f32.partialorder %v857_v32, 0.0  ;;  %v861_v34 = vmul.f32 0.1, %v857_v32 }
 0x68d   :  { %v863_v36 = vsel %vm859_vm6, %v857_v32, %v861_v34 }
 0x68e   :  { %901 = vmatmul.f32.gmra.mxu2 %v863_v36  ;;  %v950_v53 = vpop.f32.mrf.mxu1 }
 0x696   :  { %v953_v58 = vpop.f32.mrf.mxu1 }
 0x703   :  { %v899_v42 = vpop.f32.mrf.mxu2 }
 0x704   :  { %v900_v43 = vadd.f32 %v1111_v41, %v899_v42 }
 0x706   :  { %vm905_vm11 = vcmp.ge.f32.partialorder %v900_v43, 0.0  ;;  %v907_v44 = vmul.f32 0.1, %v900_v43 }
 0x708   :  { %v909_v45 = vsel %vm905_vm11, %v900_v43, %v907_v44 }
 0x709   :  { %972 = vmatmul.f32.vlgmr.msra.gmra.mxu3 %v909_v45 }
 0x711   :  { %v902_v46 = vpop.f32.mrf.mxu2 }
 0x712   :  { %v903_v47 = vadd.f32 %v1111_v41, %v902_v46 }
 0x714   :  { %vm906_vm14 = vcmp.ge.f32.partialorder %v903_v47, 0.0  ;;  %v908_v0 = vmul.f32 0.1, %v903_v47 }
 0x716   :  { %v910_v49 = vsel %vm906_vm14, %v903_v47, %v908_v0 }
 0x717   :  { %975 = vmatmul.f32.gmra.mxu3 %v910_v49 }
 0x78c   :  { %v973_v54 = vpop.f32.mrf.mxu3 }
 0x78d   :  { %v974_v55 = vadd.f32 %v973_v54, %v950_v53 }
 0x78f   :  { %v981_v56 = vadd.f32 %v1112_v52, %v974_v55 }
 0x791   :  { %vm983_vm15 = vcmp.ge.f32.partialorder %v981_v56, 0.0  ;;  %v985_v57 = vmul.f32 0.1, %v981_v56 }
 0x793   :  { %v987_v8 = vsel %vm983_vm15, %v981_v56, %v985_v57 }
 0x794   :  { %1088 = vmatmul.msk.f32.vlgmr.msrb.gmra.mxu0 %vm117_vm0, %v987_v8 }
 0x79a   :  { %v976_v59 = vpop.f32.mrf.mxu3 }
 0x79b   :  { %v977_v60 = vadd.f32 %v976_v59, %v953_v58 }
 0x79d   :  { %v982_v61 = vadd.f32 %v1112_v52, %v977_v60 }
 0x79f   :  { %vm984_vm7 = vcmp.ge.f32.partialorder %v982_v61, 0.0  ;;  %v986_v62 = vmul.f32 0.1, %v982_v61 }
 0x7a1   :  { %v988_v63 = vsel %vm984_vm7, %v982_v61, %v986_v62 }
 0x7a2   :  { %1089 = vmatmul.msk.f32.vlgmr.msra.gmra.mxu2 %vm117_vm0, %v988_v63 }
 0x811   :  { %v1016_v4 = vpop.f32.mrf.mxu0 }
 0x812   :  { %v1017_v5 = vadd.f32 %v1113_v3, %v1016_v4 }
 0x814   :  { %vm1022_vm8 = vcmp.ge.f32.partialorder %v1017_v5, 0.0  ;;  %v1024_v6 = vmul.f32 0.1, %v1017_v5 }
 0x816   :  { %v1026_v7 = vsel %vm1022_vm8, %v1017_v5, %v1024_v6 }
 0x817   :  { %1090 = vmatmul.msk.f32.vlgmr.msra.gmra.mxu1 %vm117_vm0, %v1026_v7 }
 0x825   :  { %v1019_v9 = vpop.f32.mrf.mxu2 }
 0x826   :  { %v1020_v10 = vadd.f32 %v1113_v3, %v1019_v9 }
 0x828   :  { %v1025_v11 = vmul.f32 0.1, %v1020_v10  ;;  %vm1023_vm9 = vcmp.ge.f32.partialorder %v1020_v10, 0.0 }
 0x82a   :  { %v1027_v12 = vsel %vm1023_vm9, %v1020_v10, %v1025_v11 }
 0x82b   :  { %1091 = vmatmul.msk.f32.gmra.mxu1 %vm117_vm0, %v1027_v12 }
 0x894   :  { %v1055_v14 = vpop.f32.mrf.mxu1 }
 0x895   :  { %v1056_v15 = vadd.f32 %v1114_v13, %v1055_v14 }
 0x897   :  { %vm1061_vm10 = vcmp.ge.f32.partialorder %v1056_v15, 0.0  ;;  %v1063_v16 = vmul.f32 0.1, %v1056_v15 }
 0x899   :  { %v1065_v17 = vsel %vm1061_vm10, %v1056_v15, %v1063_v16 }
 0x89a   :  { %1068 = vst.msk [vmem:[%s1437_s2] sm:$0xff] %vm1067_vm12, %v1065_v17 }
 0x8a8   :  { %v1058_v18 = vpop.f32.mrf.mxu1 }
 0x8a9   :  { %v1059_v19 = vadd.f32 %v1114_v13, %v1058_v18 }
 0x8ab   :  { %vm1062_vm13 = vcmp.ge.f32.partialorder %v1059_v19, 0.0  ;;  %v1064_v39 = vmul.f32 0.1, %v1059_v19 }
 0x8ad   :  { %v1066_v20 = vsel %vm1062_vm13, %v1059_v19, %v1064_v39 }
 0x8ae   :  { %1069 = vst.msk [vmem:[%s1437_s2 + $0x8] sm:$0xff] %vm1067_vm12, %v1066_v20 }
 0x8af   :  { %1074 = vsyncpa [#allocation3], 1 }
 0x8b0   :  { %1075 = vsyncpa [#allocation5], 1 }

</bundles_post_ra>
